<compile_context>
chip_gen: v7x
topology: tpu7x:2x2x1
jax: 0.10.0
libtpu: 0.0.40
codegen_flags: <defaults>
</compile_context>

<pallas_src>
import math

import jax
import jax.numpy as jnp
import numpy as np
from jax.experimental import pallas as pl
from jax.experimental.pallas import tpu as pltpu


# --------------------------------------------------------------------------- #
# In-kernel helpers
# --------------------------------------------------------------------------- #
def _layer_norm(x, a, b, eps=1e-6):
    # Annotated-Transformer LayerNorm: a * (x - mean) / (std + eps) + b,
    # where std is the torch-default *unbiased* (ddof=1) standard deviation.
    d = x.shape[-1]
    mu = jnp.mean(x, axis=-1, keepdims=True)
    var = jnp.sum((x - mu) ** 2, axis=-1, keepdims=True) / (d - 1)
    return a * (x - mu) / (jnp.sqrt(var) + eps) + b


# --------------------------------------------------------------------------- #
# Pallas kernel: one grid step == one batch tile, everything fused.
# --------------------------------------------------------------------------- #
def make_encoder_layer_kernel(num_heads):
    H = num_heads

    def kernel(x_ref, mask_ref,
               ln1_a_ref, ln1_b_ref,
               wq_ref, bq_ref, wk_ref, bk_ref, wv_ref, bv_ref, wo_ref, bo_ref,
               ln2_a_ref, ln2_b_ref,
               w1_ref, b1_ref, w2_ref, b2_ref,
               out_ref):
        x = x_ref[...].astype(jnp.float32)          # (TB, L, D), fp32 residual
        TB, L, D = x.shape
        DK = D // H
        M = TB * L                                  # batch folded into MXU M dim

        mask = mask_ref[...]                        # (TB, L) key-padding mask
        keep = mask[:, None, :] != 0.0              # (TB, 1, L)

        # ---------------- sublayer 0: pre-LN + self-attention + residual -----
        y = _layer_norm(x, ln1_a_ref[...], ln1_b_ref[...])
        y2 = y.reshape(M, D).astype(jnp.bfloat16)

        def proj(w_ref, b_ref):                     # (M, D) bf16 matmul, fp32 acc
            return (jnp.dot(y2, w_ref[...].astype(jnp.bfloat16),
                            preferred_element_type=jnp.float32)
                    + b_ref[...]).reshape(TB, L, D)

        q = proj(wq_ref, bq_ref)
        k = proj(wk_ref, bk_ref)
        v = proj(wv_ref, bv_ref)

        wo = wo_ref[...].astype(jnp.bfloat16)       # (D, D)
        scale = 1.0 / math.sqrt(DK)

        # Per-head attention; head output is folded straight into the output
        # projection (ctx_h @ Wo[h*DK:(h+1)*DK, :]) to avoid lane concatenation
        # and any N=1 matmuls.
        attn = jnp.zeros((M, D), jnp.float32)
        for hh in range(H):
            sl = slice(hh * DK, (hh + 1) * DK)
            qh = q[:, :, sl].astype(jnp.bfloat16)   # (TB, L, DK)
            kh = k[:, :, sl].astype(jnp.bfloat16)
            vh = v[:, :, sl].astype(jnp.bfloat16)

            s = jnp.einsum('bqd,bkd->bqk', qh, kh,
                           preferred_element_type=jnp.float32) * scale
            s = jnp.where(keep, s, -1e9)            # masked_fill(mask==0, -1e9)
            s = s - jnp.max(s, axis=-1, keepdims=True)
            p = jnp.exp(s)                          # fp32 softmax
            p = p / jnp.sum(p, axis=-1, keepdims=True)

            ctx_h = jnp.einsum('bqk,bkd->bqd',
                               p.astype(jnp.bfloat16), vh,
                               preferred_element_type=jnp.float32)   # (TB,L,DK)
            attn = attn + jnp.dot(ctx_h.reshape(M, DK).astype(jnp.bfloat16),
                                  wo[sl, :],
                                  preferred_element_type=jnp.float32)

        x = x + (attn + bo_ref[...]).reshape(TB, L, D)   # residual (dropout=id)

        # ---------------- sublayer 1: pre-LN + positionwise FFN + residual ---
        y = _layer_norm(x, ln2_a_ref[...], ln2_b_ref[...]).reshape(M, D)
        f = jnp.maximum(
            jnp.dot(y.astype(jnp.bfloat16), w1_ref[...].astype(jnp.bfloat16),
                    preferred_element_type=jnp.float32) + b1_ref[...], 0.0)
        ff = (jnp.dot(f.astype(jnp.bfloat16), w2_ref[...].astype(jnp.bfloat16),
                      preferred_element_type=jnp.float32)
              + b2_ref[...]).reshape(TB, L, D)

        out_ref[...] = (x + ff).astype(out_ref.dtype)

    return kernel


# --------------------------------------------------------------------------- #
# Wrapper
# --------------------------------------------------------------------------- #
def encoder_layer(x, mask, params, num_heads, *, batch_tile=None):
    B, L, D = x.shape
    TB = B if batch_tile is None else batch_tile    # fold the whole batch by default
    assert B % TB == 0 and D % num_heads == 0
    d_ff = params["w1"].shape[1]

    flat = [params["ln1_a"], params["ln1_b"],
            params["wq"], params["bq"], params["wk"], params["bk"],
            params["wv"], params["bv"], params["wo"], params["bo"],
            params["ln2_a"], params["ln2_b"],
            params["w1"], params["b1"], params["w2"], params["b2"]]

    def full_spec(a):
        nd = a.ndim
        return pl.BlockSpec(a.shape, lambda b, _nd=nd: (0,) * _nd)

    in_specs = [pl.BlockSpec((TB, L, D), lambda b: (b, 0, 0)),
                pl.BlockSpec((TB, L), lambda b: (b, 0))]
    in_specs += [full_spec(a) for a in flat]

    cost = pl.CostEstimate(
        flops=(4 * 2 * B * L * D * D            # q/k/v/out projections
               + 2 * 2 * B * L * L * D          # scores + context
               + 2 * 2 * B * L * D * d_ff),     # FFN
        transcendentals=B * num_heads * L * L,  # softmax exp
        bytes_accessed=4 * (2 * x.size + mask.size + sum(a.size for a in flat)))

    kernel = make_encoder_layer_kernel(num_heads)
    return pl.pallas_call(
        kernel,
        out_shape=jax.ShapeDtypeStruct((B, L, D), jnp.float32),
        grid_spec=pltpu.PrefetchScalarGridSpec(
            num_scalar_prefetch=0,
            grid=(B // TB,),
            in_specs=in_specs,
            out_specs=pl.BlockSpec((TB, L, D), lambda b: (b, 0, 0)),
        ),
        compiler_params=pltpu.CompilerParams(
            dimension_semantics=("parallel",)),
        cost_estimate=cost,
    )(x.astype(jnp.float32), mask.astype(jnp.float32), *flat)


# --------------------------------------------------------------------------- #
# Deterministic parameter init (synthetic, no checkpoint).
# Linear weights are stored pre-transposed to (in, out); y = x @ W + b is
# numerically identical to torch's x @ W_t.T + b.
# --------------------------------------------------------------------------- #
def init_params(key, d_model, d_ff):
    keys = iter(jax.random.split(key, 20))

    def w(shape, scale=0.1):
        return scale * jax.random.normal(next(keys), shape, jnp.float32)

    p = {}
    p["wq"] = w((d_model, d_model)); p["bq"] = w((1, d_model))
    p["wk"] = w((d_model, d_model)); p["bk"] = w((1, d_model))
    p["wv"] = w((d_model, d_model)); p["bv"] = w((1, d_model))
    p["wo"] = w((d_model, d_model)); p["bo"] = w((1, d_model))
    p["w1"] = w((d_model, d_ff));    p["b1"] = w((1, d_ff))
    p["w2"] = w((d_ff, d_model));    p["b2"] = w((1, d_model))
    p["ln1_a"] = 1.0 + w((1, 1, d_model)); p["ln1_b"] = w((1, 1, d_model))
    p["ln2_a"] = 1.0 + w((1, 1, d_model)); p["ln2_b"] = w((1, 1, d_model))
    return p


# --------------------------------------------------------------------------- #
# Pure-JAX reference (PyTorch EncoderLayer semantics, eval mode) for checking.
# --------------------------------------------------------------------------- #
def ref_forward(x, mask, p, H):
    B, L, D = x.shape
    DK = D // H

    def ln(z, a, b, eps=1e-6):
        mu = z.mean(-1, keepdims=True)
        var = ((z - mu) ** 2).sum(-1, keepdims=True) / (D - 1)
        return a * (z - mu) / (jnp.sqrt(var) + eps) + b

    def split_heads(z):                              # (B,L,D) -> (B,H,L,DK)
        return z.reshape(B, L, H, DK).transpose(0, 2, 1, 3)

    y = ln(x, p["ln1_a"], p["ln1_b"])
    q = split_heads(y @ p["wq"] + p["bq"])
    k = split_heads(y @ p["wk"] + p["bk"])
    v = split_heads(y @ p["wv"] + p["bv"])
    s = jnp.einsum('bhqd,bhkd->bhqk', q, k) / np.sqrt(DK)
    s = jnp.where(mask[:, None, None, :] != 0, s, -1e9)
    a = jax.nn.softmax(s, axis=-1)
    ctx = jnp.einsum('bhqk,bhkd->bhqd', a, v).transpose(0, 2, 1, 3).reshape(B, L, D)
    x = x + (ctx @ p["wo"] + p["bo"])
    y = ln(x, p["ln2_a"], p["ln2_b"])
    f = jax.nn.relu(y @ p["w1"] + p["b1"])
    return x + (f @ p["w2"] + p["b2"])


if __name__ == "__main__":
    B, L, d_model, d_ff, n_heads = 2, 16, 32, 64, 4

    key = jax.random.PRNGKey(0)
    kx, kp = jax.random.split(key)
    x = jax.random.normal(kx, (B, L, d_model), jnp.float32)
    # Key-padding mask (B, L): batch element 1 has its last 4 positions masked.
    mask = jnp.ones((B, L), jnp.float32).at[1, L - 4:].set(0.0)
    params = init_params(kp, d_model, d_ff)

    out = encoder_layer(x, mask, params, n_heads)
    out = jax.block_until_ready(out)

    ref = ref_forward(x, mask, params, n_heads)
    # bf16 matmul operands (fp32 accumulation) -> loosened tolerance.
    np.testing.assert_allclose(np.asarray(out), np.asarray(ref),
                               rtol=2e-2, atol=2e-2)
    print("KERNEL_OK")
</pallas_src>

<mosaic_0001>
module attributes {stable_mosaic.version = 11 : i64} {
  func.func @kernel(%arg0: i32, %arg1: memref<2x16x32xf32, #tpu.memory_space<vmem>>, %arg2: memref<2x16xf32, #tpu.memory_space<vmem>>, %arg3: memref<1x1x32xf32, #tpu.memory_space<vmem>>, %arg4: memref<1x1x32xf32, #tpu.memory_space<vmem>>, %arg5: memref<32x32xf32, #tpu.memory_space<vmem>>, %arg6: memref<1x32xf32, #tpu.memory_space<vmem>>, %arg7: memref<32x32xf32, #tpu.memory_space<vmem>>, %arg8: memref<1x32xf32, #tpu.memory_space<vmem>>, %arg9: memref<32x32xf32, #tpu.memory_space<vmem>>, %arg10: memref<1x32xf32, #tpu.memory_space<vmem>>, %arg11: memref<32x32xf32, #tpu.memory_space<vmem>>, %arg12: memref<1x32xf32, #tpu.memory_space<vmem>>, %arg13: memref<1x1x32xf32, #tpu.memory_space<vmem>>, %arg14: memref<1x1x32xf32, #tpu.memory_space<vmem>>, %arg15: memref<32x64xf32, #tpu.memory_space<vmem>>, %arg16: memref<1x64xf32, #tpu.memory_space<vmem>>, %arg17: memref<64x32xf32, #tpu.memory_space<vmem>>, %arg18: memref<1x32xf32, #tpu.memory_space<vmem>>, %arg19: memref<2x16x32xf32, #tpu.memory_space<vmem>>) attributes {dimension_semantics = [#tpu.dimension_semantics<parallel>], iteration_bounds = array<i64: 1>, scalar_prefetch = 0 : i64, scratch_operands = 0 : i64, tpu.core_type = #tpu.core_type<tc>, window_params = [{transform_indices = @transform_0, window_bounds = array<i64: 2, 16, 32>}, {transform_indices = @transform_1, window_bounds = array<i64: 2, 16>}, {pipeline_mode = #tpu.pipeline_mode<synchronous>, transform_indices = @transform_2, window_bounds = array<i64: 1, 1, 32>}, {pipeline_mode = #tpu.pipeline_mode<synchronous>, transform_indices = @transform_3, window_bounds = array<i64: 1, 1, 32>}, {pipeline_mode = #tpu.pipeline_mode<synchronous>, transform_indices = @transform_4, window_bounds = array<i64: 32, 32>}, {pipeline_mode = #tpu.pipeline_mode<synchronous>, transform_indices = @transform_5, window_bounds = array<i64: 1, 32>}, {pipeline_mode = #tpu.pipeline_mode<synchronous>, transform_indices = @transform_6, window_bounds = array<i64: 32, 32>}, {pipeline_mode = #tpu.pipeline_mode<synchronous>, transform_indices = @transform_7, window_bounds = array<i64: 1, 32>}, {pipeline_mode = #tpu.pipeline_mode<synchronous>, transform_indices = @transform_8, window_bounds = array<i64: 32, 32>}, {pipeline_mode = #tpu.pipeline_mode<synchronous>, transform_indices = @transform_9, window_bounds = array<i64: 1, 32>}, {pipeline_mode = #tpu.pipeline_mode<synchronous>, transform_indices = @transform_10, window_bounds = array<i64: 32, 32>}, {pipeline_mode = #tpu.pipeline_mode<synchronous>, transform_indices = @transform_11, window_bounds = array<i64: 1, 32>}, {pipeline_mode = #tpu.pipeline_mode<synchronous>, transform_indices = @transform_12, window_bounds = array<i64: 1, 1, 32>}, {pipeline_mode = #tpu.pipeline_mode<synchronous>, transform_indices = @transform_13, window_bounds = array<i64: 1, 1, 32>}, {pipeline_mode = #tpu.pipeline_mode<synchronous>, transform_indices = @transform_14, window_bounds = array<i64: 32, 64>}, {pipeline_mode = #tpu.pipeline_mode<synchronous>, transform_indices = @transform_15, window_bounds = array<i64: 1, 64>}, {pipeline_mode = #tpu.pipeline_mode<synchronous>, transform_indices = @transform_16, window_bounds = array<i64: 64, 32>}, {pipeline_mode = #tpu.pipeline_mode<synchronous>, transform_indices = @transform_17, window_bounds = array<i64: 1, 32>}, {transform_indices = @transform_18, window_bounds = array<i64: 2, 16, 32>}]} {
    %c0 = arith.constant 0 : index
    %c0_0 = arith.constant 0 : index
    %c0_1 = arith.constant 0 : index
    %0 = vector.load %arg1[%c0, %c0_0, %c0_1] : memref<2x16x32xf32, #tpu.memory_space<vmem>>, vector<2x16x32xf32>
    %c0_2 = arith.constant 0 : index
    %c0_3 = arith.constant 0 : index
    %1 = vector.load %arg2[%c0_2, %c0_3] : memref<2x16xf32, #tpu.memory_space<vmem>>, vector<2x16xf32>
    %2 = vector.shape_cast %1 : vector<2x16xf32> to vector<2x1x16xf32>
    %cst = arith.constant 0.000000e+00 : f32
    %3 = vector.broadcast %cst : f32 to vector<2x1x16xf32>
    %4 = arith.cmpf one, %2, %3 : vector<2x1x16xf32>
    %c0_4 = arith.constant 0 : index
    %c0_5 = arith.constant 0 : index
    %c0_6 = arith.constant 0 : index
    %5 = vector.load %arg3[%c0_4, %c0_5, %c0_6] : memref<1x1x32xf32, #tpu.memory_space<vmem>>, vector<1x1x32xf32>
    %c0_7 = arith.constant 0 : index
    %c0_8 = arith.constant 0 : index
    %c0_9 = arith.constant 0 : index
    %6 = vector.load %arg4[%c0_7, %c0_8, %c0_9] : memref<1x1x32xf32, #tpu.memory_space<vmem>>, vector<1x1x32xf32>
    %cst_10 = arith.constant dense<0.000000e+00> : vector<2x16xf32>
    %7 = vector.multi_reduction <add>, %0, %cst_10 [2] : vector<2x16x32xf32> to vector<2x16xf32>
    %8 = vector.shape_cast %7 : vector<2x16xf32> to vector<2x16x1xf32>
    %cst_11 = arith.constant 3.200000e+01 : f32
    %9 = vector.broadcast %cst_11 : f32 to vector<2x16x1xf32>
    %10 = arith.divf %8, %9 : vector<2x16x1xf32>
    %11 = vector.broadcast %10 : vector<2x16x1xf32> to vector<2x16x32xf32>
    %12 = arith.subf %0, %11 : vector<2x16x32xf32>
    %13 = arith.mulf %12, %12 : vector<2x16x32xf32>
    %cst_12 = arith.constant dense<0.000000e+00> : vector<2x16xf32>
    %14 = vector.multi_reduction <add>, %13, %cst_12 [2] : vector<2x16x32xf32> to vector<2x16xf32>
    %15 = vector.shape_cast %14 : vector<2x16xf32> to vector<2x16x1xf32>
    %cst_13 = arith.constant 3.100000e+01 : f32
    %16 = vector.broadcast %cst_13 : f32 to vector<2x16x1xf32>
    %17 = arith.divf %15, %16 : vector<2x16x1xf32>
    %18 = vector.broadcast %10 : vector<2x16x1xf32> to vector<2x16x32xf32>
    %19 = arith.subf %0, %18 : vector<2x16x32xf32>
    %20 = vector.broadcast %5 : vector<1x1x32xf32> to vector<2x16x32xf32>
    %21 = arith.mulf %20, %19 : vector<2x16x32xf32>
    %22 = math.sqrt %17 : vector<2x16x1xf32>
    %cst_14 = arith.constant 9.99999997E-7 : f32
    %23 = vector.broadcast %cst_14 : f32 to vector<2x16x1xf32>
    %24 = arith.addf %22, %23 : vector<2x16x1xf32>
    %25 = vector.broadcast %24 : vector<2x16x1xf32> to vector<2x16x32xf32>
    %26 = arith.divf %21, %25 : vector<2x16x32xf32>
    %27 = vector.broadcast %6 : vector<1x1x32xf32> to vector<2x16x32xf32>
    %28 = arith.addf %26, %27 : vector<2x16x32xf32>
    %29 = vector.shape_cast %28 : vector<2x16x32xf32> to vector<32x32xf32>
    %30 = arith.truncf %29 : vector<32x32xf32> to vector<32x32xbf16>
    %c0_15 = arith.constant 0 : index
    %c0_16 = arith.constant 0 : index
    %31 = vector.load %arg5[%c0_15, %c0_16] : memref<32x32xf32, #tpu.memory_space<vmem>>, vector<32x32xf32>
    %32 = arith.truncf %31 : vector<32x32xf32> to vector<32x32xbf16>
    %cst_17 = arith.constant dense<0.000000e+00> : vector<32x32xf32>
    %33 = tpu.matmul %30, %32, %cst_17 {dimension_numbers = #tpu.dot_dimension_numbers<[1], [0], [0], [1], [0, 0, 1, 1], [], []>} : vector<32x32xbf16>, vector<32x32xbf16>, vector<32x32xf32> -> vector<32x32xf32>
    %c0_18 = arith.constant 0 : index
    %c0_19 = arith.constant 0 : index
    %34 = vector.load %arg6[%c0_18, %c0_19] : memref<1x32xf32, #tpu.memory_space<vmem>>, vector<1x32xf32>
    %35 = vector.broadcast %34 : vector<1x32xf32> to vector<32x32xf32>
    %36 = arith.addf %33, %35 : vector<32x32xf32>
    %37 = vector.shape_cast %36 : vector<32x32xf32> to vector<2x16x32xf32>
    %c0_20 = arith.constant 0 : index
    %c0_21 = arith.constant 0 : index
    %38 = vector.load %arg7[%c0_20, %c0_21] : memref<32x32xf32, #tpu.memory_space<vmem>>, vector<32x32xf32>
    %39 = arith.truncf %38 : vector<32x32xf32> to vector<32x32xbf16>
    %cst_22 = arith.constant dense<0.000000e+00> : vector<32x32xf32>
    %40 = tpu.matmul %30, %39, %cst_22 {dimension_numbers = #tpu.dot_dimension_numbers<[1], [0], [0], [1], [0, 0, 1, 1], [], []>} : vector<32x32xbf16>, vector<32x32xbf16>, vector<32x32xf32> -> vector<32x32xf32>
    %c0_23 = arith.constant 0 : index
    %c0_24 = arith.constant 0 : index
    %41 = vector.load %arg8[%c0_23, %c0_24] : memref<1x32xf32, #tpu.memory_space<vmem>>, vector<1x32xf32>
    %42 = vector.broadcast %41 : vector<1x32xf32> to vector<32x32xf32>
    %43 = arith.addf %40, %42 : vector<32x32xf32>
    %44 = vector.shape_cast %43 : vector<32x32xf32> to vector<2x16x32xf32>
    %c0_25 = arith.constant 0 : index
    %c0_26 = arith.constant 0 : index
    %45 = vector.load %arg9[%c0_25, %c0_26] : memref<32x32xf32, #tpu.memory_space<vmem>>, vector<32x32xf32>
    %46 = arith.truncf %45 : vector<32x32xf32> to vector<32x32xbf16>
    %cst_27 = arith.constant dense<0.000000e+00> : vector<32x32xf32>
    %47 = tpu.matmul %30, %46, %cst_27 {dimension_numbers = #tpu.dot_dimension_numbers<[1], [0], [0], [1], [0, 0, 1, 1], [], []>} : vector<32x32xbf16>, vector<32x32xbf16>, vector<32x32xf32> -> vector<32x32xf32>
    %c0_28 = arith.constant 0 : index
    %c0_29 = arith.constant 0 : index
    %48 = vector.load %arg10[%c0_28, %c0_29] : memref<1x32xf32, #tpu.memory_space<vmem>>, vector<1x32xf32>
    %49 = vector.broadcast %48 : vector<1x32xf32> to vector<32x32xf32>
    %50 = arith.addf %47, %49 : vector<32x32xf32>
    %51 = vector.shape_cast %50 : vector<32x32xf32> to vector<2x16x32xf32>
    %c0_30 = arith.constant 0 : index
    %c0_31 = arith.constant 0 : index
    %52 = vector.load %arg11[%c0_30, %c0_31] : memref<32x32xf32, #tpu.memory_space<vmem>>, vector<32x32xf32>
    %53 = arith.truncf %52 : vector<32x32xf32> to vector<32x32xbf16>
    %cst_32 = arith.constant 0.000000e+00 : f32
    %54 = vector.broadcast %cst_32 : f32 to vector<32x32xf32>
    %55 = vector.extract_strided_slice %37 {offsets = [0, 0, 0], sizes = [2, 16, 8], strides = [1, 1, 1]} : vector<2x16x32xf32> to vector<2x16x8xf32>
    %56 = arith.truncf %55 : vector<2x16x8xf32> to vector<2x16x8xbf16>
    %57 = vector.extract_strided_slice %44 {offsets = [0, 0, 0], sizes = [2, 16, 8], strides = [1, 1, 1]} : vector<2x16x32xf32> to vector<2x16x8xf32>
    %58 = arith.truncf %57 : vector<2x16x8xf32> to vector<2x16x8xbf16>
    %59 = vector.extract_strided_slice %51 {offsets = [0, 0, 0], sizes = [2, 16, 8], strides = [1, 1, 1]} : vector<2x16x32xf32> to vector<2x16x8xf32>
    %60 = arith.truncf %59 : vector<2x16x8xf32> to vector<2x16x8xbf16>
    "tpu.trace_start"() <{level = 10 : i32, message = "bqd,bkd->bqk"}> : () -> ()
    %cst_33 = arith.constant dense<0.000000e+00> : vector<2x16x16xf32>
    %61 = tpu.matmul %56, %58, %cst_33 {dimension_numbers = #tpu.dot_dimension_numbers<[2], [2], [1], [1], [0, 0, 0, 1, 1, 1], [0], [0]>} : vector<2x16x8xbf16>, vector<2x16x8xbf16>, vector<2x16x16xf32> -> vector<2x16x16xf32>
    "tpu.trace_stop"() : () -> ()
    %cst_34 = arith.constant 0.353553385 : f32
    %62 = vector.broadcast %cst_34 : f32 to vector<2x16x16xf32>
    %63 = arith.mulf %61, %62 : vector<2x16x16xf32>
    %cst_35 = arith.constant -1.000000e+09 : f32
    %64 = vector.shape_cast %4 : vector<2x1x16xi1> to vector<2x1x16xi1>
    %65 = vector.broadcast %64 : vector<2x1x16xi1> to vector<2x16x16xi1>
    %66 = vector.broadcast %cst_35 : f32 to vector<2x16x16xf32>
    %67 = arith.select %65, %63, %66 : vector<2x16x16xi1>, vector<2x16x16xf32>
    %cst_36 = arith.constant dense<0xFF800000> : vector<2x16xf32>
    %68 = vector.multi_reduction <maximumf>, %67, %cst_36 [2] : vector<2x16x16xf32> to vector<2x16xf32>
    %69 = vector.shape_cast %68 : vector<2x16xf32> to vector<2x16x1xf32>
    %70 = vector.broadcast %69 : vector<2x16x1xf32> to vector<2x16x16xf32>
    %71 = arith.subf %67, %70 : vector<2x16x16xf32>
    %72 = math.exp %71 : vector<2x16x16xf32>
    %cst_37 = arith.constant dense<0.000000e+00> : vector<2x16xf32>
    %73 = vector.multi_reduction <add>, %72, %cst_37 [2] : vector<2x16x16xf32> to vector<2x16xf32>
    %74 = vector.shape_cast %73 : vector<2x16xf32> to vector<2x16x1xf32>
    %75 = vector.broadcast %74 : vector<2x16x1xf32> to vector<2x16x16xf32>
    %76 = arith.divf %72, %75 : vector<2x16x16xf32>
    %77 = arith.truncf %76 : vector<2x16x16xf32> to vector<2x16x16xbf16>
    "tpu.trace_start"() <{level = 10 : i32, message = "bqk,bkd->bqd"}> : () -> ()
    %cst_38 = arith.constant dense<0.000000e+00> : vector<2x16x8xf32>
    %78 = tpu.matmul %77, %60, %cst_38 {dimension_numbers = #tpu.dot_dimension_numbers<[2], [1], [1], [2], [0, 0, 0, 1, 1, 2], [0], [0]>} : vector<2x16x16xbf16>, vector<2x16x8xbf16>, vector<2x16x8xf32> -> vector<2x16x8xf32>
    "tpu.trace_stop"() : () -> ()
    %79 = vector.shape_cast %78 : vector<2x16x8xf32> to vector<32x8xf32>
    %80 = arith.truncf %79 : vector<32x8xf32> to vector<32x8xbf16>
    %81 = vector.extract_strided_slice %53 {offsets = [0, 0], sizes = [8, 32], strides = [1, 1]} : vector<32x32xbf16> to vector<8x32xbf16>
    %cst_39 = arith.constant dense<0.000000e+00> : vector<32x32xf32>
    %82 = tpu.matmul %80, %81, %cst_39 {dimension_numbers = #tpu.dot_dimension_numbers<[1], [0], [0], [1], [0, 0, 1, 1], [], []>} : vector<32x8xbf16>, vector<8x32xbf16>, vector<32x32xf32> -> vector<32x32xf32>
    %83 = arith.addf %54, %82 : vector<32x32xf32>
    %84 = vector.extract_strided_slice %37 {offsets = [0, 0, 8], sizes = [2, 16, 8], strides = [1, 1, 1]} : vector<2x16x32xf32> to vector<2x16x8xf32>
    %85 = arith.truncf %84 : vector<2x16x8xf32> to vector<2x16x8xbf16>
    %86 = vector.extract_strided_slice %44 {offsets = [0, 0, 8], sizes = [2, 16, 8], strides = [1, 1, 1]} : vector<2x16x32xf32> to vector<2x16x8xf32>
    %87 = arith.truncf %86 : vector<2x16x8xf32> to vector<2x16x8xbf16>
    %88 = vector.extract_strided_slice %51 {offsets = [0, 0, 8], sizes = [2, 16, 8], strides = [1, 1, 1]} : vector<2x16x32xf32> to vector<2x16x8xf32>
    %89 = arith.truncf %88 : vector<2x16x8xf32> to vector<2x16x8xbf16>
    "tpu.trace_start"() <{level = 10 : i32, message = "bqd,bkd->bqk"}> : () -> ()
    %cst_40 = arith.constant dense<0.000000e+00> : vector<2x16x16xf32>
    %90 = tpu.matmul %85, %87, %cst_40 {dimension_numbers = #tpu.dot_dimension_numbers<[2], [2], [1], [1], [0, 0, 0, 1, 1, 1], [0], [0]>} : vector<2x16x8xbf16>, vector<2x16x8xbf16>, vector<2x16x16xf32> -> vector<2x16x16xf32>
    "tpu.trace_stop"() : () -> ()
    %cst_41 = arith.constant 0.353553385 : f32
    %91 = vector.broadcast %cst_41 : f32 to vector<2x16x16xf32>
    %92 = arith.mulf %90, %91 : vector<2x16x16xf32>
    %cst_42 = arith.constant -1.000000e+09 : f32
    %93 = vector.shape_cast %4 : vector<2x1x16xi1> to vector<2x1x16xi1>
    %94 = vector.broadcast %93 : vector<2x1x16xi1> to vector<2x16x16xi1>
    %95 = vector.broadcast %cst_42 : f32 to vector<2x16x16xf32>
    %96 = arith.select %94, %92, %95 : vector<2x16x16xi1>, vector<2x16x16xf32>
    %cst_43 = arith.constant dense<0xFF800000> : vector<2x16xf32>
    %97 = vector.multi_reduction <maximumf>, %96, %cst_43 [2] : vector<2x16x16xf32> to vector<2x16xf32>
    %98 = vector.shape_cast %97 : vector<2x16xf32> to vector<2x16x1xf32>
    %99 = vector.broadcast %98 : vector<2x16x1xf32> to vector<2x16x16xf32>
    %100 = arith.subf %96, %99 : vector<2x16x16xf32>
    %101 = math.exp %100 : vector<2x16x16xf32>
    %cst_44 = arith.constant dense<0.000000e+00> : vector<2x16xf32>
    %102 = vector.multi_reduction <add>, %101, %cst_44 [2] : vector<2x16x16xf32> to vector<2x16xf32>
    %103 = vector.shape_cast %102 : vector<2x16xf32> to vector<2x16x1xf32>
    %104 = vector.broadcast %103 : vector<2x16x1xf32> to vector<2x16x16xf32>
    %105 = arith.divf %101, %104 : vector<2x16x16xf32>
    %106 = arith.truncf %105 : vector<2x16x16xf32> to vector<2x16x16xbf16>
    "tpu.trace_start"() <{level = 10 : i32, message = "bqk,bkd->bqd"}> : () -> ()
    %cst_45 = arith.constant dense<0.000000e+00> : vector<2x16x8xf32>
    %107 = tpu.matmul %106, %89, %cst_45 {dimension_numbers = #tpu.dot_dimension_numbers<[2], [1], [1], [2], [0, 0, 0, 1, 1, 2], [0], [0]>} : vector<2x16x16xbf16>, vector<2x16x8xbf16>, vector<2x16x8xf32> -> vector<2x16x8xf32>
    "tpu.trace_stop"() : () -> ()
    %108 = vector.shape_cast %107 : vector<2x16x8xf32> to vector<32x8xf32>
    %109 = arith.truncf %108 : vector<32x8xf32> to vector<32x8xbf16>
    %110 = vector.extract_strided_slice %53 {offsets = [8, 0], sizes = [8, 32], strides = [1, 1]} : vector<32x32xbf16> to vector<8x32xbf16>
    %cst_46 = arith.constant dense<0.000000e+00> : vector<32x32xf32>
    %111 = tpu.matmul %109, %110, %cst_46 {dimension_numbers = #tpu.dot_dimension_numbers<[1], [0], [0], [1], [0, 0, 1, 1], [], []>} : vector<32x8xbf16>, vector<8x32xbf16>, vector<32x32xf32> -> vector<32x32xf32>
    %112 = arith.addf %83, %111 : vector<32x32xf32>
    %113 = vector.extract_strided_slice %37 {offsets = [0, 0, 16], sizes = [2, 16, 8], strides = [1, 1, 1]} : vector<2x16x32xf32> to vector<2x16x8xf32>
    %114 = arith.truncf %113 : vector<2x16x8xf32> to vector<2x16x8xbf16>
    %115 = vector.extract_strided_slice %44 {offsets = [0, 0, 16], sizes = [2, 16, 8], strides = [1, 1, 1]} : vector<2x16x32xf32> to vector<2x16x8xf32>
    %116 = arith.truncf %115 : vector<2x16x8xf32> to vector<2x16x8xbf16>
    %117 = vector.extract_strided_slice %51 {offsets = [0, 0, 16], sizes = [2, 16, 8], strides = [1, 1, 1]} : vector<2x16x32xf32> to vector<2x16x8xf32>
    %118 = arith.truncf %117 : vector<2x16x8xf32> to vector<2x16x8xbf16>
    "tpu.trace_start"() <{level = 10 : i32, message = "bqd,bkd->bqk"}> : () -> ()
    %cst_47 = arith.constant dense<0.000000e+00> : vector<2x16x16xf32>
    %119 = tpu.matmul %114, %116, %cst_47 {dimension_numbers = #tpu.dot_dimension_numbers<[2], [2], [1], [1], [0, 0, 0, 1, 1, 1], [0], [0]>} : vector<2x16x8xbf16>, vector<2x16x8xbf16>, vector<2x16x16xf32> -> vector<2x16x16xf32>
    "tpu.trace_stop"() : () -> ()
    %cst_48 = arith.constant 0.353553385 : f32
    %120 = vector.broadcast %cst_48 : f32 to vector<2x16x16xf32>
    %121 = arith.mulf %119, %120 : vector<2x16x16xf32>
    %cst_49 = arith.constant -1.000000e+09 : f32
    %122 = vector.shape_cast %4 : vector<2x1x16xi1> to vector<2x1x16xi1>
    %123 = vector.broadcast %122 : vector<2x1x16xi1> to vector<2x16x16xi1>
    %124 = vector.broadcast %cst_49 : f32 to vector<2x16x16xf32>
    %125 = arith.select %123, %121, %124 : vector<2x16x16xi1>, vector<2x16x16xf32>
    %cst_50 = arith.constant dense<0xFF800000> : vector<2x16xf32>
    %126 = vector.multi_reduction <maximumf>, %125, %cst_50 [2] : vector<2x16x16xf32> to vector<2x16xf32>
    %127 = vector.shape_cast %126 : vector<2x16xf32> to vector<2x16x1xf32>
    %128 = vector.broadcast %127 : vector<2x16x1xf32> to vector<2x16x16xf32>
    %129 = arith.subf %125, %128 : vector<2x16x16xf32>
    %130 = math.exp %129 : vector<2x16x16xf32>
    %cst_51 = arith.constant dense<0.000000e+00> : vector<2x16xf32>
    %131 = vector.multi_reduction <add>, %130, %cst_51 [2] : vector<2x16x16xf32> to vector<2x16xf32>
    %132 = vector.shape_cast %131 : vector<2x16xf32> to vector<2x16x1xf32>
    %133 = vector.broadcast %132 : vector<2x16x1xf32> to vector<2x16x16xf32>
    %134 = arith.divf %130, %133 : vector<2x16x16xf32>
    %135 = arith.truncf %134 : vector<2x16x16xf32> to vector<2x16x16xbf16>
    "tpu.trace_start"() <{level = 10 : i32, message = "bqk,bkd->bqd"}> : () -> ()
    %cst_52 = arith.constant dense<0.000000e+00> : vector<2x16x8xf32>
    %136 = tpu.matmul %135, %118, %cst_52 {dimension_numbers = #tpu.dot_dimension_numbers<[2], [1], [1], [2], [0, 0, 0, 1, 1, 2], [0], [0]>} : vector<2x16x16xbf16>, vector<2x16x8xbf16>, vector<2x16x8xf32> -> vector<2x16x8xf32>
    "tpu.trace_stop"() : () -> ()
    %137 = vector.shape_cast %136 : vector<2x16x8xf32> to vector<32x8xf32>
    %138 = arith.truncf %137 : vector<32x8xf32> to vector<32x8xbf16>
    %139 = vector.extract_strided_slice %53 {offsets = [16, 0], sizes = [8, 32], strides = [1, 1]} : vector<32x32xbf16> to vector<8x32xbf16>
    %cst_53 = arith.constant dense<0.000000e+00> : vector<32x32xf32>
    %140 = tpu.matmul %138, %139, %cst_53 {dimension_numbers = #tpu.dot_dimension_numbers<[1], [0], [0], [1], [0, 0, 1, 1], [], []>} : vector<32x8xbf16>, vector<8x32xbf16>, vector<32x32xf32> -> vector<32x32xf32>
    %141 = arith.addf %112, %140 : vector<32x32xf32>
    %142 = vector.extract_strided_slice %37 {offsets = [0, 0, 24], sizes = [2, 16, 8], strides = [1, 1, 1]} : vector<2x16x32xf32> to vector<2x16x8xf32>
    %143 = arith.truncf %142 : vector<2x16x8xf32> to vector<2x16x8xbf16>
    %144 = vector.extract_strided_slice %44 {offsets = [0, 0, 24], sizes = [2, 16, 8], strides = [1, 1, 1]} : vector<2x16x32xf32> to vector<2x16x8xf32>
    %145 = arith.truncf %144 : vector<2x16x8xf32> to vector<2x16x8xbf16>
    %146 = vector.extract_strided_slice %51 {offsets = [0, 0, 24], sizes = [2, 16, 8], strides = [1, 1, 1]} : vector<2x16x32xf32> to vector<2x16x8xf32>
    %147 = arith.truncf %146 : vector<2x16x8xf32> to vector<2x16x8xbf16>
    "tpu.trace_start"() <{level = 10 : i32, message = "bqd,bkd->bqk"}> : () -> ()
    %cst_54 = arith.constant dense<0.000000e+00> : vector<2x16x16xf32>
    %148 = tpu.matmul %143, %145, %cst_54 {dimension_numbers = #tpu.dot_dimension_numbers<[2], [2], [1], [1], [0, 0, 0, 1, 1, 1], [0], [0]>} : vector<2x16x8xbf16>, vector<2x16x8xbf16>, vector<2x16x16xf32> -> vector<2x16x16xf32>
    "tpu.trace_stop"() : () -> ()
    %cst_55 = arith.constant 0.353553385 : f32
    %149 = vector.broadcast %cst_55 : f32 to vector<2x16x16xf32>
    %150 = arith.mulf %148, %149 : vector<2x16x16xf32>
    %cst_56 = arith.constant -1.000000e+09 : f32
    %151 = vector.shape_cast %4 : vector<2x1x16xi1> to vector<2x1x16xi1>
    %152 = vector.broadcast %151 : vector<2x1x16xi1> to vector<2x16x16xi1>
    %153 = vector.broadcast %cst_56 : f32 to vector<2x16x16xf32>
    %154 = arith.select %152, %150, %153 : vector<2x16x16xi1>, vector<2x16x16xf32>
    %cst_57 = arith.constant dense<0xFF800000> : vector<2x16xf32>
    %155 = vector.multi_reduction <maximumf>, %154, %cst_57 [2] : vector<2x16x16xf32> to vector<2x16xf32>
    %156 = vector.shape_cast %155 : vector<2x16xf32> to vector<2x16x1xf32>
    %157 = vector.broadcast %156 : vector<2x16x1xf32> to vector<2x16x16xf32>
    %158 = arith.subf %154, %157 : vector<2x16x16xf32>
    %159 = math.exp %158 : vector<2x16x16xf32>
    %cst_58 = arith.constant dense<0.000000e+00> : vector<2x16xf32>
    %160 = vector.multi_reduction <add>, %159, %cst_58 [2] : vector<2x16x16xf32> to vector<2x16xf32>
    %161 = vector.shape_cast %160 : vector<2x16xf32> to vector<2x16x1xf32>
    %162 = vector.broadcast %161 : vector<2x16x1xf32> to vector<2x16x16xf32>
    %163 = arith.divf %159, %162 : vector<2x16x16xf32>
    %164 = arith.truncf %163 : vector<2x16x16xf32> to vector<2x16x16xbf16>
    "tpu.trace_start"() <{level = 10 : i32, message = "bqk,bkd->bqd"}> : () -> ()
    %cst_59 = arith.constant dense<0.000000e+00> : vector<2x16x8xf32>
    %165 = tpu.matmul %164, %147, %cst_59 {dimension_numbers = #tpu.dot_dimension_numbers<[2], [1], [1], [2], [0, 0, 0, 1, 1, 2], [0], [0]>} : vector<2x16x16xbf16>, vector<2x16x8xbf16>, vector<2x16x8xf32> -> vector<2x16x8xf32>
    "tpu.trace_stop"() : () -> ()
    %166 = vector.shape_cast %165 : vector<2x16x8xf32> to vector<32x8xf32>
    %167 = arith.truncf %166 : vector<32x8xf32> to vector<32x8xbf16>
    %168 = vector.extract_strided_slice %53 {offsets = [24, 0], sizes = [8, 32], strides = [1, 1]} : vector<32x32xbf16> to vector<8x32xbf16>
    %cst_60 = arith.constant dense<0.000000e+00> : vector<32x32xf32>
    %169 = tpu.matmul %167, %168, %cst_60 {dimension_numbers = #tpu.dot_dimension_numbers<[1], [0], [0], [1], [0, 0, 1, 1], [], []>} : vector<32x8xbf16>, vector<8x32xbf16>, vector<32x32xf32> -> vector<32x32xf32>
    %170 = arith.addf %141, %169 : vector<32x32xf32>
    %c0_61 = arith.constant 0 : index
    %c0_62 = arith.constant 0 : index
    %171 = vector.load %arg12[%c0_61, %c0_62] : memref<1x32xf32, #tpu.memory_space<vmem>>, vector<1x32xf32>
    %172 = vector.broadcast %171 : vector<1x32xf32> to vector<32x32xf32>
    %173 = arith.addf %170, %172 : vector<32x32xf32>
    %174 = vector.shape_cast %173 : vector<32x32xf32> to vector<2x16x32xf32>
    %175 = arith.addf %0, %174 : vector<2x16x32xf32>
    %c0_63 = arith.constant 0 : index
    %c0_64 = arith.constant 0 : index
    %c0_65 = arith.constant 0 : index
    %176 = vector.load %arg13[%c0_63, %c0_64, %c0_65] : memref<1x1x32xf32, #tpu.memory_space<vmem>>, vector<1x1x32xf32>
    %c0_66 = arith.constant 0 : index
    %c0_67 = arith.constant 0 : index
    %c0_68 = arith.constant 0 : index
    %177 = vector.load %arg14[%c0_66, %c0_67, %c0_68] : memref<1x1x32xf32, #tpu.memory_space<vmem>>, vector<1x1x32xf32>
    %cst_69 = arith.constant dense<0.000000e+00> : vector<2x16xf32>
    %178 = vector.multi_reduction <add>, %175, %cst_69 [2] : vector<2x16x32xf32> to vector<2x16xf32>
    %179 = vector.shape_cast %178 : vector<2x16xf32> to vector<2x16x1xf32>
    %cst_70 = arith.constant 3.200000e+01 : f32
    %180 = vector.broadcast %cst_70 : f32 to vector<2x16x1xf32>
    %181 = arith.divf %179, %180 : vector<2x16x1xf32>
    %182 = vector.broadcast %181 : vector<2x16x1xf32> to vector<2x16x32xf32>
    %183 = arith.subf %175, %182 : vector<2x16x32xf32>
    %184 = arith.mulf %183, %183 : vector<2x16x32xf32>
    %cst_71 = arith.constant dense<0.000000e+00> : vector<2x16xf32>
    %185 = vector.multi_reduction <add>, %184, %cst_71 [2] : vector<2x16x32xf32> to vector<2x16xf32>
    %186 = vector.shape_cast %185 : vector<2x16xf32> to vector<2x16x1xf32>
    %cst_72 = arith.constant 3.100000e+01 : f32
    %187 = vector.broadcast %cst_72 : f32 to vector<2x16x1xf32>
    %188 = arith.divf %186, %187 : vector<2x16x1xf32>
    %189 = vector.broadcast %181 : vector<2x16x1xf32> to vector<2x16x32xf32>
    %190 = arith.subf %175, %189 : vector<2x16x32xf32>
    %191 = vector.broadcast %176 : vector<1x1x32xf32> to vector<2x16x32xf32>
    %192 = arith.mulf %191, %190 : vector<2x16x32xf32>
    %193 = math.sqrt %188 : vector<2x16x1xf32>
    %cst_73 = arith.constant 9.99999997E-7 : f32
    %194 = vector.broadcast %cst_73 : f32 to vector<2x16x1xf32>
    %195 = arith.addf %193, %194 : vector<2x16x1xf32>
    %196 = vector.broadcast %195 : vector<2x16x1xf32> to vector<2x16x32xf32>
    %197 = arith.divf %192, %196 : vector<2x16x32xf32>
    %198 = vector.broadcast %177 : vector<1x1x32xf32> to vector<2x16x32xf32>
    %199 = arith.addf %197, %198 : vector<2x16x32xf32>
    %200 = vector.shape_cast %199 : vector<2x16x32xf32> to vector<32x32xf32>
    %201 = arith.truncf %200 : vector<32x32xf32> to vector<32x32xbf16>
    %c0_74 = arith.constant 0 : index
    %c0_75 = arith.constant 0 : index
    %202 = vector.load %arg15[%c0_74, %c0_75] : memref<32x64xf32, #tpu.memory_space<vmem>>, vector<32x64xf32>
    %203 = arith.truncf %202 : vector<32x64xf32> to vector<32x64xbf16>
    %cst_76 = arith.constant dense<0.000000e+00> : vector<32x64xf32>
    %204 = tpu.matmul %201, %203, %cst_76 {dimension_numbers = #tpu.dot_dimension_numbers<[1], [0], [0], [1], [0, 0, 1, 1], [], []>} : vector<32x32xbf16>, vector<32x64xbf16>, vector<32x64xf32> -> vector<32x64xf32>
    %c0_77 = arith.constant 0 : index
    %c0_78 = arith.constant 0 : index
    %205 = vector.load %arg16[%c0_77, %c0_78] : memref<1x64xf32, #tpu.memory_space<vmem>>, vector<1x64xf32>
    %206 = vector.broadcast %205 : vector<1x64xf32> to vector<32x64xf32>
    %207 = arith.addf %204, %206 : vector<32x64xf32>
    %cst_79 = arith.constant 0.000000e+00 : f32
    %208 = vector.broadcast %cst_79 : f32 to vector<32x64xf32>
    %209 = arith.maximumf %207, %208 : vector<32x64xf32>
    %210 = arith.truncf %209 : vector<32x64xf32> to vector<32x64xbf16>
    %c0_80 = arith.constant 0 : index
    %c0_81 = arith.constant 0 : index
    %211 = vector.load %arg17[%c0_80, %c0_81] : memref<64x32xf32, #tpu.memory_space<vmem>>, vector<64x32xf32>
    %212 = arith.truncf %211 : vector<64x32xf32> to vector<64x32xbf16>
    %cst_82 = arith.constant dense<0.000000e+00> : vector<32x32xf32>
    %213 = tpu.matmul %210, %212, %cst_82 {dimension_numbers = #tpu.dot_dimension_numbers<[1], [0], [0], [1], [0, 0, 1, 1], [], []>} : vector<32x64xbf16>, vector<64x32xbf16>, vector<32x32xf32> -> vector<32x32xf32>
    %c0_83 = arith.constant 0 : index
    %c0_84 = arith.constant 0 : index
    %214 = vector.load %arg18[%c0_83, %c0_84] : memref<1x32xf32, #tpu.memory_space<vmem>>, vector<1x32xf32>
    %215 = vector.broadcast %214 : vector<1x32xf32> to vector<32x32xf32>
    %216 = arith.addf %213, %215 : vector<32x32xf32>
    %217 = vector.shape_cast %216 : vector<32x32xf32> to vector<2x16x32xf32>
    %218 = arith.addf %175, %217 : vector<2x16x32xf32>
    %c0_85 = arith.constant 0 : index
    %c0_86 = arith.constant 0 : index
    %c0_87 = arith.constant 0 : index
    %219 = vector.load %arg19[%c0_85, %c0_86, %c0_87] : memref<2x16x32xf32, #tpu.memory_space<vmem>>, vector<2x16x32xf32>
    tpu.vector_store %arg19[%c0_85, %c0_86, %c0_87], %218 {strides = array<i32>} : memref<2x16x32xf32, #tpu.memory_space<vmem>>, vector<2x16x32xf32>,
    return
  }
  func.func @transform_0(%arg0: i32) -> (i32, i32, i32) {
    %c0_i32 = arith.constant 0 : i32
    %c0_i32_0 = arith.constant 0 : i32
    %c0_i32_1 = arith.constant 0 : i32
    return %arg0, %c0_i32, %c0_i32_0 : i32, i32, i32
  }
  func.func @transform_1(%arg0: i32) -> (i32, i32) {
    %c0_i32 = arith.constant 0 : i32
    %c0_i32_0 = arith.constant 0 : i32
    return %arg0, %c0_i32 : i32, i32
  }
  func.func @transform_2(%arg0: i32) -> (i32, i32, i32) {
    %c0_i32 = arith.constant 0 : i32
    %c0_i32_0 = arith.constant 0 : i32
    %c0_i32_1 = arith.constant 0 : i32
    %c0_i32_2 = arith.constant 0 : i32
    return %c0_i32, %c0_i32_0, %c0_i32_1 : i32, i32, i32
  }
  func.func @transform_3(%arg0: i32) -> (i32, i32, i32) {
    %c0_i32 = arith.constant 0 : i32
    %c0_i32_0 = arith.constant 0 : i32
    %c0_i32_1 = arith.constant 0 : i32
    %c0_i32_2 = arith.constant 0 : i32
    return %c0_i32, %c0_i32_0, %c0_i32_1 : i32, i32, i32
  }
  func.func @transform_4(%arg0: i32) -> (i32, i32) {
    %c0_i32 = arith.constant 0 : i32
    %c0_i32_0 = arith.constant 0 : i32
    %c0_i32_1 = arith.constant 0 : i32
    return %c0_i32, %c0_i32_0 : i32, i32
  }
  func.func @transform_5(%arg0: i32) -> (i32, i32) {
    %c0_i32 = arith.constant 0 : i32
    %c0_i32_0 = arith.constant 0 : i32
    %c0_i32_1 = arith.constant 0 : i32
    return %c0_i32, %c0_i32_0 : i32, i32
  }
  func.func @transform_6(%arg0: i32) -> (i32, i32) {
    %c0_i32 = arith.constant 0 : i32
    %c0_i32_0 = arith.constant 0 : i32
    %c0_i32_1 = arith.constant 0 : i32
    return %c0_i32, %c0_i32_0 : i32, i32
  }
  func.func @transform_7(%arg0: i32) -> (i32, i32) {
    %c0_i32 = arith.constant 0 : i32
    %c0_i32_0 = arith.constant 0 : i32
    %c0_i32_1 = arith.constant 0 : i32
    return %c0_i32, %c0_i32_0 : i32, i32
  }
  func.func @transform_8(%arg0: i32) -> (i32, i32) {
    %c0_i32 = arith.constant 0 : i32
    %c0_i32_0 = arith.constant 0 : i32
    %c0_i32_1 = arith.constant 0 : i32
    return %c0_i32, %c0_i32_0 : i32, i32
  }
  func.func @transform_9(%arg0: i32) -> (i32, i32) {
    %c0_i32 = arith.constant 0 : i32
    %c0_i32_0 = arith.constant 0 : i32
    %c0_i32_1 = arith.constant 0 : i32
    return %c0_i32, %c0_i32_0 : i32, i32
  }
  func.func @transform_10(%arg0: i32) -> (i32, i32) {
    %c0_i32 = arith.constant 0 : i32
    %c0_i32_0 = arith.constant 0 : i32
    %c0_i32_1 = arith.constant 0 : i32
    return %c0_i32, %c0_i32_0 : i32, i32
  }
  func.func @transform_11(%arg0: i32) -> (i32, i32) {
    %c0_i32 = arith.constant 0 : i32
    %c0_i32_0 = arith.constant 0 : i32
    %c0_i32_1 = arith.constant 0 : i32
    return %c0_i32, %c0_i32_0 : i32, i32
  }
  func.func @transform_12(%arg0: i32) -> (i32, i32, i32) {
    %c0_i32 = arith.constant 0 : i32
    %c0_i32_0 = arith.constant 0 : i32
    %c0_i32_1 = arith.constant 0 : i32
    %c0_i32_2 = arith.constant 0 : i32
    return %c0_i32, %c0_i32_0, %c0_i32_1 : i32, i32, i32
  }
  func.func @transform_13(%arg0: i32) -> (i32, i32, i32) {
    %c0_i32 = arith.constant 0 : i32
    %c0_i32_0 = arith.constant 0 : i32
    %c0_i32_1 = arith.constant 0 : i32
    %c0_i32_2 = arith.constant 0 : i32
    return %c0_i32, %c0_i32_0, %c0_i32_1 : i32, i32, i32
  }
  func.func @transform_14(%arg0: i32) -> (i32, i32) {
    %c0_i32 = arith.constant 0 : i32
    %c0_i32_0 = arith.constant 0 : i32
    %c0_i32_1 = arith.constant 0 : i32
    return %c0_i32, %c0_i32_0 : i32, i32
  }
  func.func @transform_15(%arg0: i32) -> (i32, i32) {
    %c0_i32 = arith.constant 0 : i32
    %c0_i32_0 = arith.constant 0 : i32
    %c0_i32_1 = arith.constant 0 : i32
    return %c0_i32, %c0_i32_0 : i32, i32
  }
  func.func @transform_16(%arg0: i32) -> (i32, i32) {
    %c0_i32 = arith.constant 0 : i32
    %c0_i32_0 = arith.constant 0 : i32
    %c0_i32_1 = arith.constant 0 : i32
    return %c0_i32, %c0_i32_0 : i32, i32
  }
  func.func @transform_17(%arg0: i32) -> (i32, i32) {
    %c0_i32 = arith.constant 0 : i32
    %c0_i32_0 = arith.constant 0 : i32
    %c0_i32_1 = arith.constant 0 : i32
    return %c0_i32, %c0_i32_0 : i32, i32
  }
  func.func @transform_18(%arg0: i32) -> (i32, i32, i32) {
    %c0_i32 = arith.constant 0 : i32
    %c0_i32_0 = arith.constant 0 : i32
    %c0_i32_1 = arith.constant 0 : i32
    return %arg0, %c0_i32, %c0_i32_0 : i32, i32, i32
  }
}

</mosaic_0001>

<bundles_post_ra>
// kernel: tpu_custom_call.1
= control target key start
LH: loop header
LB: loop body
LE: loop exit
PB: predicated region body
PF: predicated region fallthrough
CT: control target
= control target key end

     0   :  { %s3116_s0 = inlined_call_operand.vmem [shape: f32[2,16,32], index: 0, kind: input, shape index: {}]   ;;  %s3117_s1 = inlined_call_operand.vmem [shape: f32[2,16], index: 1, kind: input, shape index: {}]   ;;  %s3118_s2 = inlined_call_operand.vmem [shape: f32[1,1,32], index: 2, kind: input, shape index: {}]   ;;  %s3119_s3 = inlined_call_operand.vmem [shape: f32[1,1,32], index: 3, kind: input, shape index: {}]   ;;  %s3120_s4 = inlined_call_operand.vmem [shape: f32[32,32], index: 4, kind: input, shape index: {}]   ;;  %s3121_s5 = inlined_call_operand.vmem [shape: f32[1,32], index: 5, kind: input, shape index: {}]   ;;  %s3122_s6 = inlined_call_operand.vmem [shape: f32[32,32], index: 6, kind: input, shape index: {}]   ;;  %s3123_s7 = inlined_call_operand.vmem [shape: f32[1,32], index: 7, kind: input, shape index: {}]   ;;  %s3124_s8 = inlined_call_operand.hbm [shape: f32[32,32], index: 8, kind: input, shape index: {}]   ;;  %s3125_s9 = inlined_call_operand.vmem [shape: f32[1,32], index: 9, kind: input, shape index: {}]   ;;  %s3126_s10 = inlined_call_operand.hbm [shape: f32[32,32], index: 10, kind: input, shape index: {}]   ;;  %s3127_s11 = inlined_call_operand.vmem [shape: f32[1,32], index: 11, kind: input, shape index: {}]   ;;  %s3128_s12 = inlined_call_operand.vmem [shape: f32[1,1,32], index: 12, kind: input, shape index: {}]   ;;  %s3129_s13 = inlined_call_operand.vmem [shape: f32[1,1,32], index: 13, kind: input, shape index: {}]   ;;  %s3130_s14 = inlined_call_operand.hbm [shape: f32[32,64], index: 14, kind: input, shape index: {}]   ;;  %s3131_s15 = inlined_call_operand.vmem [shape: f32[1,64], index: 15, kind: input, shape index: {}]   ;;  %s3132_s16 = inlined_call_operand.vmem [shape: f32[64,32], index: 16, kind: input, shape index: {}]   ;;  %s3133_s17 = inlined_call_operand.vmem [shape: f32[1,32], index: 17, kind: input, shape index: {}]   ;;  %s3134_s18 = inlined_call_operand.hbm [shape: f32[2,16,32], index: 18, kind: output, shape index: {}]  }
   0x1   :  { %3136 = sst [smem:[#allocation12_spill]] %s3116_s0 }
   0x2   :  { %3137 = sst [smem:[#allocation13_spill]] %s3117_s1 }
   0x3   :  { %3138 = sst [smem:[#allocation14_spill]] %s3118_s2 }
   0x4   :  { %23 = vsyncpa [#allocation3], 0 }
   0x5   :  { %24 = vsyncpa [#allocation6], 0 }
   0x6   :  { %25 = vsyncpa [#allocation4], 0  ;;  %s2496_s27 = smov [#allocation5]   ;;  %s2497_s29 = smov [#allocation2]  }
   0x7   :  { %s61_s28 = sshll.u32 %s2496_s27, 4  ;;  %s47_s30 = sshll.u32 %s2497_s29, 4  ;;  %s62_s28 = int_to_ptr.vmem [resolvable:$true] %s61_s28  ;;  %s2604_s30 = int_to_ptr.vmem [resolvable:$true] %s47_s30 }
   0x8   :  { %s2402_s1 = scalar_lea.hbm %s3126_s10, 512 }
   0x9   :  { %p2403_p0 = scmp.ne.s32.totalorder %s3126_s10, %s2402_s1  ;;  %p2406_p1 = scmp.lt.u32.totalorder %s2402_s1, %s3126_s10 }
   0xb   :  { %p2408_p2 = pnand %p2406_p1, %p2403_p0 }
   0xd   :  { %2411 = shalt.err (!%p2408_p2)
}
   0xe   :  { %s2412_s23 = scalar_lea.vmem %s62_s28, 512  ;;  %p2417_p4 = scmp.lt.s32.totalorder %s62_s28, %s62_s28 }
   0xf   :  { %p2413_p3 = scmp.ne.s32.totalorder %s62_s28, %s2412_s23  ;;  %p2418_p5 = scmp.lt.s32.totalorder %s2412_s23, %s2412_s23 }
  0x11   :  { %p2419_p6 = por %p2418_p5, %p2417_p4 }
  0x13   :  { %p2420_p7 = pnand %p2419_p6, %p2413_p3 }
  0x15   :  { %2423 = shalt.err (!%p2420_p7)
}
  0x16   :  { %s2498_s24 = smov 128   ;;  %s2499_s25 = smov 8  }
  0x17   :  { %67 = dma.hbm_to_vmem [thread:$0]  %s3126_s10, 512, %s62_s28, [#allocation6], %s2498_s24, %s2498_s24, %s2499_s25  }
  0x18   :  { %s2424_s19 = scalar_lea.hbm %s3124_s8, 512 }
  0x19   :  { %p2425_p8 = scmp.ne.s32.totalorder %s3124_s8, %s2424_s19  ;;  %p2428_p9 = scmp.lt.u32.totalorder %s2424_s19, %s3124_s8 }
  0x1b   :  { %p2430_p10 = pnand %p2428_p9, %p2425_p8 }
  0x1d   :  { %2433 = shalt.err (!%p2430_p10)
}
  0x1e   :  { %s2434_s2 = scalar_lea.vmem %s2604_s30, 512  ;;  %p2439_p12 = scmp.lt.s32.totalorder %s2604_s30, %s2604_s30 }
  0x1f   :  { %p2435_p11 = scmp.ne.s32.totalorder %s2604_s30, %s2434_s2  ;;  %p2440_p13 = scmp.lt.s32.totalorder %s2434_s2, %s2434_s2 }
  0x21   :  { %p2441_p0 = por %p2440_p13, %p2439_p12 }
  0x23   :  { %p2442_p1 = pnand %p2441_p0, %p2435_p11 }
  0x25   :  { %2445 = shalt.err (!%p2442_p1)
}
  0x26   :  { %53 = dma.hbm_to_vmem [thread:$0]  %s3124_s8, 512, %s2604_s30, [#allocation3], %s2498_s24, %s2498_s24, %s2499_s25  }
  0x27   :  { %s2500_s23 = smov [#allocation7]   ;;  %s2446_s0 = scalar_lea.hbm %s3130_s14, 512 }
  0x28   :  { %s79_s26 = sshll.u32 %s2500_s23, 4  ;;  %p2447_p2 = scmp.ne.s32.totalorder %s3130_s14, %s2446_s0  ;;  %s80_s26 = int_to_ptr.vmem [resolvable:$true] %s79_s26 }
  0x29   :  { %p2450_p3 = scmp.lt.u32.totalorder %s2446_s0, %s3130_s14 }
  0x2b   :  { %p2452_p4 = pnand %p2450_p3, %p2447_p2 }
  0x2d   :  { %2455 = shalt.err (!%p2452_p4)
}
  0x2e   :  { %s2456_s22 = scalar_lea.vmem %s80_s26, 512  ;;  %p2461_p6 = scmp.lt.s32.totalorder %s80_s26, %s80_s26 }
  0x2f   :  { %p2457_p5 = scmp.ne.s32.totalorder %s80_s26, %s2456_s22  ;;  %p2462_p7 = scmp.lt.s32.totalorder %s2456_s22, %s2456_s22 }
  0x31   :  { %p2463_p8 = por %p2462_p7, %p2461_p6 }
  0x33   :  { %p2464_p9 = pnand %p2463_p8, %p2457_p5 }
  0x35   :  { %2467 = shalt.err (!%p2464_p9)
}
  0x36   :  { %85 = dma.hbm_to_vmem [thread:$0]  %s3130_s14, 512, %s80_s26, [#allocation6], %s2498_s24, %s2498_s24, %s2499_s25  }
  0x37   :  { %2490 = dma.done.wait [#allocation3], 512  }
  0x38   :  { %2491 = vsyncadd [#allocation3], 4294966784 }
  0x39   :  { %2492 = dma.done.wait [#allocation6], 1024  }
  0x3a   :  { %2493 = vsyncadd [#allocation6], 4294966272  ;;  %vm136_vm0 = vcmask 261120   ;;  %s3139_s28 = sld [smem:[#allocation12_spill]]  ;;  %v241_v28 = vld [vmem:[%s3120_s4] sm:$0xff]  ;;  %v242_v29 = vld [vmem:[%s3120_s4 + $0x8] sm:$0xff] }
  0x3b   :  { %v371_v30 = vld [vmem:[#allocation2] sm:$0xff]  ;;  %v245_v31 = vpack.c.bf16 %v242_v29, %v241_v28  ;;  %v372_v32 = vld [vmem:[#allocation2 + $0x8] sm:$0xff]  ;;  %v243_v33 = vld [vmem:[%s3120_s4 + $0x10] sm:$0xff]  ;;  %s3140_s14 = sld [smem:[#allocation14_spill]]  ;;  %vm2502_vm9 = vmmov 0   ;;  %vm445_vm10 = vcmask 64512  }
  0x3c   :  { %v244_v34 = vld [vmem:[%s3120_s4 + $0x18] sm:$0xff]  ;;  %v375_v35 = vpack.c.bf16 %v372_v32, %v371_v30  ;;  %v373_v37 = vld [vmem:[#allocation2 + $0x10] sm:$0xff]  ;;  %v309_v40 = vld [vmem:[%s3122_s6] sm:$0xff]  ;;  %s3141_s10 = sld [smem:[#allocation13_spill]]  ;;  %vm560_vm14 = vcmask 130048   ;;  %s2505_s23 = smov 120  }
  0x3d   :  { %v246_v36 = vpack.c.bf16 %v244_v34, %v243_v33  ;;  %2109 = vmatprep.subr.bf16.mxu1 %v245_v31  ;;  %v374_v38 = vld [vmem:[#allocation2 + $0x18] sm:$0xff]  ;;  %v310_v41 = vld [vmem:[%s3122_s6 + $0x8] sm:$0xff]  ;;  %v2501_v34 = vmov 0.0   ;;  %s2506_s27 = smov 112   ;;  %s2507_s29 = smov 104  }
  0x3e   :  { %2125 = vmatprep.subr.bf16.mxu0 %v375_v35  ;;  %2110 = vmatpush3.bf16.msra.mxu1 %v245_v31  ;;  %v376_v39 = vpack.c.bf16 %v374_v38, %v373_v37  ;;  %v2710_v42 = vpack.c.bf16 %v310_v41, %v309_v40  ;;  %v312_v31 = vld [vmem:[%s3122_s6 + $0x18] sm:$0xff]  ;;  %v2007_v38 = vld [vmem:[%s3125_s9] ss:$0 sm:$0xff] }
  0x3f   :  { %2126 = vmatpush3.bf16.msra.mxu0 %v375_v35  ;;  %2111 = vmatprep.subr.bf16.mxu1 %v246_v36 }
  0x40   :  { %v102_v0 = vld [vmem:[%s3139_s28] sm:$0xff]  ;;  %v104_v1 = vld [vmem:[%s3139_s28 + $0x10] sm:$0xff]  ;;  %v103_v2 = vld [vmem:[%s3139_s28 + $0x8] sm:$0xff]  ;;  %2127 = vmatprep.subr.bf16.mxu0 %v376_v39 }
  0x41   :  { %v137_v3 = vsel %vm136_vm0, %v102_v0, 0.0  ;;  %v143_v4 = vsel %vm136_vm0, %v104_v1, 0.0  ;;  %v105_v5 = vld [vmem:[%s3139_s28 + $0x18] sm:$0xff]  ;;  %v140_v6 = vsel %vm136_vm0, %v103_v2, 0.0 }
  0x42   :  { %138 = vadd.xlane.f32.xlu0 %v137_v3  ;;  %144 = vadd.xlane.f32.xlu1 %v143_v4  ;;  %v146_v7 = vsel %vm136_vm0, %v105_v5, 0.0 }
  0x43   :  { %2112 = vmatpush3.bf16.msra.mxu1 %v246_v36  ;;  %2128 = vmatpush3.bf16.msra.mxu0 %v376_v39  ;;  %v2001_v36 = vld [vmem:[%s3121_s5] ss:$0 sm:$0xff] }
  0x44   :  { %2117 = vmatprep.subr.bf16.mxu1 %v2710_v42  ;;  %2139 = vmatprep.subr.bf16.mxu0 %v2501_v34 }
  0x46   :  { %141 = vadd.xlane.f32.xlu0 %v140_v6  ;;  %147 = vadd.xlane.f32.xlu1 %v146_v7 }
  0xcf   :  { %v139_v8 = vpop.xlane.xlu0 %138  ;;  %v145_v9 = vpop.xlane.xlu1 %144 }
  0xd0   :  { %v150_v10 = vmul.f32 0.03125, %v139_v8  ;;  %v152_v11 = vmul.f32 0.03125, %v145_v9 }
  0xd2   :  { %v2672_v12 = vsub.f32 %v102_v0, %v150_v10  ;;  %v2674_v13 = vsub.f32 %v104_v1, %v152_v11  ;;  %v1999_v11 = vld [vmem:[%s3140_s14] ss:$0 sm:$0xff] }
  0xd3   :  { %v142_v14 = vpop.xlane.xlu0 %141  ;;  %v148_v15 = vpop.xlane.xlu1 %147 }
  0xd4   :  { %v151_v16 = vmul.f32 0.03125, %v142_v14  ;;  %v153_v17 = vmul.f32 0.03125, %v148_v15  ;;  %v158_v18 = vmul.f32 %v2672_v12, %v2672_v12  ;;  %v160_v19 = vmul.f32 %v2674_v13, %v2674_v13 }
  0xd5   :  { %v185_v15 = vmul.f32 %v1999_v11, %v2672_v12 }
  0xd6   :  { %v2680_v20 = vsub.f32 %v103_v2, %v151_v16  ;;  %v2682_v21 = vsub.f32 %v105_v5, %v153_v17  ;;  %v162_v22 = vsel %vm136_vm0, %v158_v18, 0.0  ;;  %v168_v25 = vsel %vm136_vm0, %v160_v19, 0.0  ;;  %v2000_v19 = vld [vmem:[%s3119_s3] ss:$0 sm:$0xff] }
  0xd7   :  { %163 = vadd.xlane.f32.xlu0 %v162_v22 }
  0xd8   :  { %v159_v23 = vmul.f32 %v2680_v20, %v2680_v20  ;;  %v161_v24 = vmul.f32 %v2682_v21, %v2682_v21  ;;  %v186_v16 = vmul.f32 %v1999_v11, %v2680_v20  ;;  %v311_v20 = vld [vmem:[%s3122_s6 + $0x10] sm:$0xff] }
  0xd9   :  { %v314_v33 = vpack.c.bf16 %v312_v31, %v311_v20 }
  0xda   :  { %v165_v26 = vsel %vm136_vm0, %v159_v23, 0.0  ;;  %v171_v27 = vsel %vm136_vm0, %v161_v24, 0.0  ;;  %v187_v23 = vmul.f32 %v1999_v11, %v2674_v13 }
  0xdb   :  { %166 = vadd.xlane.f32.xlu1 %v165_v26  ;;  %169 = vadd.xlane.f32.xlu0 %v168_v25  ;;  %v188_v25 = vmul.f32 %v1999_v11, %v2682_v21 }
  0xdf   :  { %172 = vadd.xlane.f32.xlu1 %v171_v27 }
 0x164   :  { %v164_v43 = vpop.xlane.xlu0 %163 }
 0x165   :  { %v175_v44 = vmul.f32 0.032258064, %v164_v43 }
 0x167   :  { %2302 = vrsqrt.f32 %v175_v44  ;;  %vm191_vm1 = vcmp.eq.f32.partialorder %v175_v44, inf  ;;  %v194_v53 = vand.u32 2147483648, %v175_v44  ;;  %vm193_vm2 = vcmp.eq.f32.partialorder %v175_v44, 0.0 }
 0x168   :  { %v167_v45 = vpop.xlane.xlu1 %166  ;;  %v170_v47 = vpop.xlane.xlu0 %169 }
 0x169   :  { %v176_v46 = vmul.f32 0.032258064, %v167_v45  ;;  %v177_v48 = vmul.f32 0.032258064, %v170_v47 }
 0x16b   :  { %2304 = vrsqrt.f32 %v176_v46  ;;  %vm198_vm3 = vcmp.eq.f32.partialorder %v176_v46, inf  ;;  %v201_v59 = vand.u32 2147483648, %v176_v46  ;;  %vm200_vm4 = vcmp.eq.f32.partialorder %v176_v46, 0.0 }
 0x16c   :  { %2306 = vrsqrt.f32 %v177_v48  ;;  %v173_v49 = vpop.xlane.xlu1 %172  ;;  %vm205_vm5 = vcmp.eq.f32.partialorder %v177_v48, inf  ;;  %v208_v63 = vand.u32 2147483648, %v177_v48  ;;  %vm207_vm6 = vcmp.eq.f32.partialorder %v177_v48, 0.0 }
 0x16d   :  { %v178_v50 = vmul.f32 0.032258064, %v173_v49 }
 0x16f   :  { %2308 = vrsqrt.f32 %v178_v50  ;;  %vm212_vm7 = vcmp.eq.f32.partialorder %v178_v50, inf  ;;  %v215_v7 = vand.u32 2147483648, %v178_v50  ;;  %vm214_vm8 = vcmp.eq.f32.partialorder %v178_v50, 0.0 }
 0x171   :  { %v2303_v51 = vpop.eup %2302 }
 0x172   :  { %v190_v52 = vmul.f32 %v2303_v51, %v175_v44 }
 0x174   :  { %v192_v55 = vsel %vm191_vm1, %v175_v44, %v190_v52  ;;  %vm963_vm1 = vcmask 1043456  }
 0x175   :  { %v2305_v54 = vpop.eup %2304  ;;  %v195_v58 = vsel %vm193_vm2, %v194_v53, %v192_v55 }
 0x176   :  { %v2307_v56 = vpop.eup %2306  ;;  %v197_v57 = vmul.f32 %v2305_v54, %v176_v46  ;;  %v217_v61 = vadd.f32 1e-06, %v195_v58  ;;  %v2004_v58 = vld [vmem:[%s3123_s7] ss:$0 sm:$0xff] }
 0x177   :  { %v204_v60 = vmul.f32 %v2307_v56, %v177_v48 }
 0x178   :  { %v199_v62 = vsel %vm198_vm3, %v176_v46, %v197_v57  ;;  %2310 = vrcp.f32 %v217_v61 }
 0x179   :  { %v2309_v0 = vpop.eup %2308  ;;  %v206_v1 = vsel %vm205_vm5, %v177_v48, %v204_v60  ;;  %v202_v2 = vsel %vm200_vm4, %v201_v59, %v199_v62 }
 0x17a   :  { %v209_v3 = vsel %vm207_vm6, %v208_v63, %v206_v1  ;;  %v211_v4 = vmul.f32 %v2309_v0, %v178_v50  ;;  %v218_v5 = vadd.f32 1e-06, %v202_v2 }
 0x17b   :  { %v219_v6 = vadd.f32 1e-06, %v209_v3 }
 0x17c   :  { %v213_v8 = vsel %vm212_vm7, %v178_v50, %v211_v4  ;;  %2312 = vrcp.f32 %v218_v5 }
 0x17d   :  { %2314 = vrcp.f32 %v219_v6  ;;  %v216_v9 = vsel %vm214_vm8, %v215_v7, %v213_v8  ;;  %v2503_v6 = vmov 1966171168   ;;  %v119_v8 = vlaneseq }
 0x17e   :  { %v220_v10 = vadd.f32 1e-06, %v216_v9  ;;  %v117_v7 = vunpack.c.l.s4 %v2503_v6 }
 0x180   :  { %2316 = vrcp.f32 %v220_v10  ;;  %v118_v9 = vunpack.c.0.s8 %v117_v7  ;;  %v120_v10 = vshrl.u32 %v119_v8, 7 }
 0x182   :  { %v2311_v14 = vpop.eup %2310  ;;  %v121_v11 = vsub.s32 %v118_v9, %v120_v10 }
 0x183   :  { %v222_v17 = vmul.f32 %v2311_v14, %v185_v15  ;;  %v1998_v14 = vld.sshfl [vmem:[%s3141_s10] sm:$0x11 pattern:$0x75316420] }
 0x184   :  { %v122_v15 = vrot.slane %v1998_v14, %v121_v11 }
 0x185   :  { %v235_v26 = vadd.f32 %v2000_v19, %v222_v17  ;;  %v2504_v17 = vmov 0  }
 0x186   :  { %v2313_v18 = vpop.eup %2312  ;;  %vm132_vm11 = vcmp.ne.f32.partialorder %v122_v15, 0.0 }
 0x187   :  { %v2315_v22 = vpop.eup %2314  ;;  %v224_v24 = vmul.f32 %v2313_v18, %v186_v16  ;;  %v548_v16 = vsub.s32 0, %v120_v10  ;;  %v544_v18 = vsel %vm132_vm11, 1, %v2504_v17 }
 0x188   :  { %v226_v28 = vmul.f32 %v2315_v22, %v187_v23  ;;  %v115_v22 = vcombine.high %v1998_v14, %v1998_v14 }
 0x189   :  { %v236_v27 = vadd.f32 %v2000_v19, %v224_v24 }
 0x18a   :  { %v2317_v29 = vpop.eup %2316  ;;  %v237_v13 = vadd.f32 %v2000_v19, %v226_v28  ;;  %v129_v23 = vrot.slane %v115_v22, %v121_v11 }
 0x18b   :  { %v239_v30 = vpack.c.bf16 %v236_v27, %v235_v26  ;;  %v228_v12 = vmul.f32 %v2317_v29, %v188_v25 }
 0x18c   :  { %vm133_vm12 = vcmp.ne.f32.partialorder %v129_v23, 0.0 }
 0x18d   :  { %2113 = vmatprep.mubr.msk.bf16.mxu1 %vm136_vm0, %v239_v30  ;;  %2129 = vmatprep.mubr.msk.bf16.mxu0 %vm136_vm0, %v239_v30  ;;  %v238_v21 = vadd.f32 %v2000_v19, %v228_v12  ;;  %v2784_v19 = vrot.slane %v544_v18, %v548_v16  ;;  %v545_v24 = vsel %vm133_vm12, 1, %v2504_v17 }
 0x18e   :  { %v2786_v25 = vrot.slane %v545_v24, %v548_v16 }
 0x18f   :  { %v240_v32 = vpack.c.bf16 %v238_v21, %v237_v13  ;;  %vm554_vm15 = vcmp.eq.s32.totalorder %v2784_v19, 1 }
 0x190   :  { %vm555_vm13 = vcmp.eq.s32.totalorder %v2786_v25, 1 }
 0x191   :  { %2114 = vmatmul.mubr.msk.bf16.vlgmr.msra.gmra.mrb[0].mxu1 %vm136_vm0, %v240_v32  ;;  %2130 = vmatmul.mubr.msk.bf16.vlgmr.msra.gmra.mrb[0].mxu0 %vm136_vm0, %v240_v32 }
 0x192   :  { %2118 = vmatpush3.bf16.msra.mxu1 %v2710_v42  ;;  %2121 = vmatprep.mubr.msk.bf16.mxu1 %vm136_vm0, %v239_v30 }
 0x193   :  { %2119 = vmatprep.subr.bf16.mxu1 %v314_v33  ;;  %2141 = vmatprep.mubr.msk.bf16.mxu0 %vm2502_vm9, %v2501_v34 }
 0x196   :  { %2120 = vmatpush3.bf16.msra.mxu1 %v314_v33 }
 0x197   :  { %2133 = vmatprep.subr.bf16.mxu1 %v2501_v34 }
 0x199   :  { %2122 = vmatmul.mubr.msk.bf16.vlgmr.msra.gmra.mrb[4].mxu1 %vm136_vm0, %v240_v32 }
 0x19a   :  { %2135 = vmatprep.mubr.msk.bf16.mxu1 %vm2502_vm9, %v2501_v34 }
 0x264   :  { %v2115_v35 = vpop.f32.mrb[0].mxu1  ;;  %v2131_v37 = vpop.f32.mrb[0].mxu0 }
 0x265   :  { %v294_v39 = vpop.f32.mrb[1].mxu1  ;;  %v418_v40 = vpop.f32.mrb[1].mxu0  ;;  %v303_v43 = vadd.f32 %v2115_v35, %v2001_v36  ;;  %v427_v44 = vadd.f32 %v2131_v37, %v2007_v38 }
 0x266   :  { %v2116_v41 = vpop.f32.mrb[2].mxu1  ;;  %v2132_v42 = vpop.f32.mrb[2].mxu0  ;;  %v295_v49 = vadd.f32 %v2001_v36, %v294_v39  ;;  %v419_v50 = vadd.f32 %v2007_v38, %v418_v40 }
 0x267   :  { %v306_v45 = vadd.f32 %v2116_v41, %v2001_v36  ;;  %v430_v46 = vadd.f32 %v2132_v42, %v2007_v38  ;;  %v297_v47 = vpop.f32.mrb[3].mxu1  ;;  %v421_v48 = vpop.f32.mrb[3].mxu0 }
 0x268   :  { %v298_v51 = vadd.f32 %v2001_v36, %v297_v47  ;;  %v422_v52 = vadd.f32 %v2007_v38, %v421_v48 }
 0x269   :  { %v2748_v53 = vpack.c.bf16 %v306_v45, %v303_v43  ;;  %v2750_v54 = vpack.c.bf16 %v430_v46, %v427_v44 }
 0x26a   :  { %v2752_v55 = vpack.c.bf16 %v298_v51, %v295_v49  ;;  %v2754_v56 = vpack.c.bf16 %v422_v52, %v419_v50 }
 0x26c   :  { %v2123_v57 = vpop.f32.mrb[4].mxu1 }
 0x26d   :  { %v356_v59 = vpop.f32.mrb[5].mxu1  ;;  %v365_v61 = vadd.f32 %v2123_v57, %v2004_v58 }
 0x26e   :  { %v2124_v60 = vpop.f32.mrb[6].mxu1  ;;  %v357_v0 = vadd.f32 %v2004_v58, %v356_v59 }
 0x26f   :  { %v368_v62 = vadd.f32 %v2124_v60, %v2004_v58  ;;  %v359_v63 = vpop.f32.mrb[7].mxu1 }
 0x270   :  { %v360_v1 = vadd.f32 %v2004_v58, %v359_v63 }
 0x271   :  { %v2759_v2 = vpack.c.bf16 %v368_v62, %v365_v61 }
 0x272   :  { %v2761_v3 = vpack.c.bf16 %v360_v1, %v357_v0 }
 0x273   :  { %v497_v4 = vsel %vm445_vm10, %v2759_v2, 0 }
 0x274   :  { %2140 = vmatpush3.bf16.xpose.msra.mxu0 %v497_v4  ;;  %v450_v5 = vsel %vm445_vm10, %v2761_v3, 0 }
 0x275   :  { %2134 = vmatpush3.bf16.xpose.msra.mxu1 %v450_v5  ;;  %2151 = vmatprep.subr.bf16.mxu0 %v2501_v34 }
 0x276   :  { %2145 = vmatprep.subr.bf16.mxu1 %v2501_v34 }
 0x27b   :  { %2142 = vmatmul.mubr.msk.bf16.vlgmr.msra.gmra.mrb[4].mxu0 %vm445_vm10, %v2748_v53 }
 0x27c   :  { %2136 = vmatmul.mubr.msk.bf16.vlgmr.msra.gmra.mrb[8].mxu1 %vm445_vm10, %v2752_v55  ;;  %2152 = vmatpush3.bf16.msra.mxu0 %v2750_v54 }
 0x27d   :  { %2146 = vmatpush3.bf16.msra.mxu1 %v2754_v56  ;;  %2153 = vmatprep.mubr.msk.bf16.mxu0 %vm2502_vm9, %v2501_v34 }
 0x27e   :  { %2163 = vmatprep.subr.bf16.mxu0 %v2501_v34  ;;  %2147 = vmatprep.mubr.msk.bf16.mxu1 %vm2502_vm9, %v2501_v34 }
 0x27f   :  { %2157 = vmatprep.subr.bf16.mxu1 %v2501_v34 }
 0x34e   :  { %v533_v26 = vpop.f32.mrb[4].mxu0 }
 0x34f   :  { %v542_v27 = vmul.f32 0.35355338, %v533_v26  ;;  %v486_v28 = vpop.f32.mrb[8].mxu1  ;;  %v2143_v29 = vpop.f32.mrb[5].mxu0 }
 0x350   :  { %v2137_v30 = vpop.f32.mrb[9].mxu1  ;;  %v536_v12 = vpop.f32.mrb[6].mxu0  ;;  %v540_v48 = vmul.f32 0.35355338, %v486_v28 }
 0x351   :  { %v543_v20 = vmul.f32 0.35355338, %v536_v12  ;;  %v489_v31 = vpop.f32.mrb[10].mxu1  ;;  %v2144_v13 = vpop.f32.mrb[7].mxu0  ;;  %v558_v21 = vsel %vm555_vm13, %v542_v27, -1e+09 }
 0x352   :  { %v2138_v32 = vpop.f32.mrb[11].mxu1  ;;  %v567_v33 = vsel %vm560_vm14, %v558_v21, -inf  ;;  %v541_v47 = vmul.f32 0.35355338, %v489_v31  ;;  %v556_v50 = vsel %vm554_vm15, %v540_v48, -1e+09 }
 0x353   :  { %568 = vmax.xlane.f32.xlu0 %v567_v33  ;;  %v559_v35 = vsel %vm555_vm13, %v543_v20, -1e+09  ;;  %v561_v52 = vsel %vm560_vm14, %v556_v50, -inf }
 0x354   :  { %v570_v36 = vsel %vm560_vm14, %v559_v35, -inf  ;;  %v557_v49 = vsel %vm554_vm15, %v541_v47, -1e+09 }
 0x355   :  { %571 = vmax.xlane.f32.xlu1 %v570_v36  ;;  %v564_v51 = vsel %vm560_vm14, %v557_v49, -inf }
 0x3e0   :  { %v569_v37 = vpop.xlane.xlu0 %568 }
 0x3e1   :  { %v575_v38 = vsub.f32 %v558_v21, %v569_v37 }
 0x3e2   :  { %v572_v39 = vpop.xlane.xlu1 %571 }
 0x3e3   :  { %v581_v40 = vmul.f32 1.442695, %v575_v38  ;;  %v576_v41 = vsub.f32 %v559_v35, %v572_v39 }
 0x3e5   :  { %2318 = vpow2.f32 %v581_v40  ;;  %v583_v42 = vmul.f32 1.442695, %v576_v41 }
 0x3e7   :  { %2320 = vpow2.f32 %v583_v42 }
 0x3ef   :  { %v2319_v43 = vpop.eup %2318 }
 0x3f0   :  { %v591_v44 = vsel %vm560_vm14, %v2319_v43, 0.0 }
 0x3f1   :  { %v2321_v45 = vpop.eup %2320  ;;  %592 = vadd.xlane.f32.xlu0 %v591_v44 }
 0x3f2   :  { %v594_v46 = vsel %vm560_vm14, %v2321_v45, 0.0 }
 0x3f3   :  { %595 = vadd.xlane.f32.xlu1 %v594_v46 }
 0x404   :  { %751 = vrot.lane.b32.xlu1 %v2748_v53, %s2505_s23 }
 0x407   :  { %754 = vrot.lane.b32.xlu0 %v2759_v2, %s2505_s23 }
 0x426   :  { %565 = vmax.xlane.f32.xlu0 %v564_v51 }
 0x428   :  { %562 = vmax.xlane.f32.xlu1 %v561_v52 }
 0x47e   :  { %v593_v57 = vpop.xlane.xlu0 %592 }
 0x47f   :  { %2322 = vrcp.f32 %v593_v57 }
 0x480   :  { %v596_v58 = vpop.xlane.xlu1 %595 }
 0x481   :  { %2324 = vrcp.f32 %v596_v58 }
 0x482   :  { %v755_v63 = vpop.permute.xlu0 %754 }
 0x483   :  { %v760_v1 = vsel %vm445_vm10, %v755_v63, 0 }
 0x484   :  { %v752_v4 = vpop.permute.xlu1 %751 }
 0x489   :  { %v2323_v59 = vpop.eup %2322 }
 0x48a   :  { %v602_v61 = vmul.f32 %v2323_v59, %v2319_v43 }
 0x48b   :  { %v2325_v60 = vpop.eup %2324 }
 0x48c   :  { %v604_v62 = vmul.f32 %v2325_v60, %v2321_v45 }
 0x48e   :  { %v606_v0 = vpack.c.bf16 %v604_v62, %v602_v61 }
 0x490   :  { %2154 = vmatmul.mubr.msk.bf16.vlgmr.msra.gmra.mrb[8].mxu0 %vm560_vm14, %v606_v0 }
 0x491   :  { %2164 = vmatpush3.bf16.xpose.msra.mxu0 %v760_v1  ;;  %2165 = vmatprep.mubr.msk.bf16.mxu0 %vm2502_vm9, %v2501_v34 }
 0x492   :  { %2175 = vmatprep.subr.bf16.mxu0 %v2501_v34 }
 0x498   :  { %2166 = vmatmul.mubr.msk.bf16.vlgmr.msra.gmra.mrb[12].mxu0 %vm445_vm10, %v752_v4 }
 0x499   :  { %2177 = vmatprep.mubr.msk.bf16.mxu0 %vm2502_vm9, %v2501_v34 }
 0x4b3   :  { %v566_v5 = vpop.xlane.xlu0 %565 }
 0x4b4   :  { %v574_v6 = vsub.f32 %v557_v49, %v566_v5 }
 0x4b5   :  { %v563_v7 = vpop.xlane.xlu1 %562 }
 0x4b6   :  { %v579_v8 = vmul.f32 1.442695, %v574_v6  ;;  %v573_v9 = vsub.f32 %v556_v50, %v563_v7 }
 0x4b8   :  { %2326 = vpow2.f32 %v579_v8  ;;  %v577_v10 = vmul.f32 1.442695, %v573_v9 }
 0x4ba   :  { %2328 = vpow2.f32 %v577_v10 }
 0x4c2   :  { %v2327_v11 = vpop.eup %2326 }
 0x4c3   :  { %v588_v14 = vsel %vm560_vm14, %v2327_v11, 0.0 }
 0x4c4   :  { %v2329_v15 = vpop.eup %2328  ;;  %589 = vadd.xlane.f32.xlu1 %v588_v14 }
 0x4c5   :  { %v585_v16 = vsel %vm560_vm14, %v2329_v15, 0.0 }
 0x4c6   :  { %586 = vadd.xlane.f32.xlu0 %v585_v16 }
 0x4d5   :  { %698 = vrot.lane.b32.xlu1 %v2752_v55, %s2505_s23 }
 0x4dc   :  { %701 = vrot.lane.b32.xlu0 %v2761_v3, %s2505_s23 }
 0x551   :  { %v590_v17 = vpop.xlane.xlu1 %589 }
 0x552   :  { %2330 = vrcp.f32 %v590_v17 }
 0x553   :  { %v587_v18 = vpop.xlane.xlu0 %586 }
 0x554   :  { %2332 = vrcp.f32 %v587_v18 }
 0x555   :  { %v699_v21 = vpop.permute.xlu1 %698 }
 0x557   :  { %v702_v27 = vpop.permute.xlu0 %701 }
 0x558   :  { %v707_v29 = vsel %vm445_vm10, %v702_v27, 0 }
 0x55c   :  { %v2331_v22 = vpop.eup %2330 }
 0x55d   :  { %v600_v24 = vmul.f32 %v2331_v22, %v2327_v11 }
 0x55e   :  { %v2333_v23 = vpop.eup %2332 }
 0x55f   :  { %v598_v26 = vmul.f32 %v2333_v23, %v2329_v15 }
 0x561   :  { %v605_v28 = vpack.c.bf16 %v600_v24, %v598_v26 }
 0x563   :  { %2148 = vmatmul.mubr.msk.bf16.vlgmr.msra.gmra.mrb[12].mxu1 %vm560_vm14, %v605_v28  ;;  %v2824_v30 = vpop.f32.mrb[8].mxu0 }
 0x564   :  { %2158 = vmatpush3.bf16.xpose.msra.mxu1 %v707_v29  ;;  %v2155_v12 = vpop.f32.mrb[9].mxu0  ;;  %2159 = vmatprep.mubr.msk.bf16.mxu1 %vm2502_vm9, %v2501_v34 }
 0x565   :  { %v2828_v20 = vpop.f32.mrb[10].mxu0  ;;  %2169 = vmatprep.subr.bf16.mxu1 %v2501_v34 }
 0x566   :  { %v696_v31 = vpack.c.bf16 %v2828_v20, %v2824_v30  ;;  %v2156_v13 = vpop.f32.mrb[11].mxu0 }
 0x56b   :  { %2160 = vmatmul.mubr.msk.bf16.vlgmr.msra.gmra.mrb[16].mxu1 %vm445_vm10, %v699_v21  ;;  %v796_v32 = vpop.f32.mrb[12].mxu0 }
 0x56c   :  { %v805_v33 = vmul.f32 0.35355338, %v796_v32  ;;  %v2167_v35 = vpop.f32.mrb[13].mxu0  ;;  %2171 = vmatprep.mubr.msk.bf16.mxu1 %vm2502_vm9, %v2501_v34 }
 0x56d   :  { %v799_v36 = vpop.f32.mrb[14].mxu0 }
 0x56e   :  { %v806_v37 = vmul.f32 0.35355338, %v799_v36  ;;  %v2168_v38 = vpop.f32.mrb[15].mxu0  ;;  %v809_v39 = vsel %vm555_vm13, %v805_v33, -1e+09 }
 0x56f   :  { %v817_v40 = vsel %vm560_vm14, %v809_v39, -inf }
 0x570   :  { %818 = vmax.xlane.f32.xlu1 %v817_v40  ;;  %v810_v41 = vsel %vm555_vm13, %v806_v37, -1e+09 }
 0x571   :  { %v820_v42 = vsel %vm560_vm14, %v810_v41, -inf }
 0x572   :  { %821 = vmax.xlane.f32.xlu0 %v820_v42 }
 0x581   :  { %1076 = vrot.lane.b32.xlu1 %v2761_v3, %s2506_s27 }
 0x5fd   :  { %v819_v43 = vpop.xlane.xlu1 %818 }
 0x5fe   :  { %v825_v44 = vsub.f32 %v809_v39, %v819_v43 }
 0x5ff   :  { %v822_v45 = vpop.xlane.xlu0 %821 }
 0x600   :  { %v831_v46 = vmul.f32 1.442695, %v825_v44  ;;  %v826_v47 = vsub.f32 %v810_v41, %v822_v45 }
 0x601   :  { %v1077_v10 = vpop.permute.xlu1 %1076 }
 0x602   :  { %2334 = vpow2.f32 %v831_v46  ;;  %v833_v48 = vmul.f32 1.442695, %v826_v47  ;;  %v1082_v26 = vsel %vm445_vm10, %v1077_v10, 0 }
 0x604   :  { %2336 = vpow2.f32 %v833_v48 }
 0x60c   :  { %v2335_v49 = vpop.eup %2334 }
 0x60d   :  { %v841_v50 = vsel %vm560_vm14, %v2335_v49, 0.0 }
 0x60e   :  { %v2337_v51 = vpop.eup %2336  ;;  %842 = vadd.xlane.f32.xlu0 %v841_v50 }
 0x60f   :  { %v844_v52 = vsel %vm560_vm14, %v2337_v51, 0.0 }
 0x610   :  { %845 = vadd.xlane.f32.xlu1 %v844_v52 }
 0x621   :  { %1074 = vrot.lane.b32.xlu1 %v2752_v55, %s2506_s27 }
 0x624   :  { %906 = vrot.lane.b32.xlu0 %v2750_v54, %s2505_s23 }
 0x625   :  { %1127 = vrot.lane.b32.xlu1 %v2759_v2, %s2506_s27 }
 0x628   :  { %1125 = vrot.lane.b32.xlu0 %v2748_v53, %s2506_s27 }
 0x636   :  { %v2854_v57 = vpop.f32.mrb[12].mxu1 }
 0x637   :  { %v2149_v58 = vpop.f32.mrb[13].mxu1 }
 0x638   :  { %v2856_v59 = vpop.f32.mrb[14].mxu1 }
 0x639   :  { %v695_v60 = vpack.c.bf16 %v2856_v59, %v2854_v57  ;;  %v2150_v61 = vpop.f32.mrb[15].mxu1 }
 0x63e   :  { %v743_v62 = vpop.f32.mrb[16].mxu1 }
 0x63f   :  { %v2161_v63 = vpop.f32.mrb[17].mxu1  ;;  %v803_v1 = vmul.f32 0.35355338, %v743_v62 }
 0x640   :  { %v746_v0 = vpop.f32.mrb[18].mxu1 }
 0x641   :  { %v804_v4 = vmul.f32 0.35355338, %v746_v0  ;;  %v2162_v5 = vpop.f32.mrb[19].mxu1  ;;  %v807_v7 = vsel %vm554_vm15, %v803_v1, -1e+09 }
 0x642   :  { %v811_v9 = vsel %vm560_vm14, %v807_v7, -inf }
 0x643   :  { %v808_v6 = vsel %vm554_vm15, %v804_v4, -1e+09 }
 0x644   :  { %v814_v8 = vsel %vm560_vm14, %v808_v6, -inf }
 0x647   :  { %815 = vmax.xlane.f32.xlu0 %v814_v8 }
 0x649   :  { %812 = vmax.xlane.f32.xlu1 %v811_v9 }
 0x65a   :  { %858 = vrot.lane.b32.xlu1 %v2754_v56, %s2505_s23 }
 0x69b   :  { %v843_v11 = vpop.xlane.xlu0 %842 }
 0x69c   :  { %2338 = vrcp.f32 %v843_v11 }
 0x69d   :  { %v846_v14 = vpop.xlane.xlu1 %845 }
 0x69e   :  { %2340 = vrcp.f32 %v846_v14 }
 0x69f   :  { %v907_v15 = vpop.permute.xlu0 %906 }
 0x6a0   :  { %2176 = vmatpush3.bf16.msra.mxu0 %v907_v15 }
 0x6a1   :  { %2193 = vmatprep.subr.bf16.mxu0 %v2501_v34  ;;  %v1075_v24 = vpop.permute.xlu1 %1074 }
 0x6a3   :  { %v1126_v29 = vpop.permute.xlu0 %1125 }
 0x6a5   :  { %v1128_v27 = vpop.permute.xlu1 %1127 }
 0x6a6   :  { %v2339_v16 = vpop.eup %2338  ;;  %v1133_v28 = vsel %vm445_vm10, %v1128_v27, 0 }
 0x6a7   :  { %v852_v18 = vmul.f32 %v2339_v16, %v2335_v49 }
 0x6a8   :  { %v2341_v17 = vpop.eup %2340 }
 0x6a9   :  { %v854_v22 = vmul.f32 %v2341_v17, %v2337_v51 }
 0x6ab   :  { %v856_v23 = vpack.c.bf16 %v854_v22, %v852_v18 }
 0x6ad   :  { %2178 = vmatmul.mubr.msk.bf16.vlgmr.msra.gmra.mrb[16].mxu0 %vm560_vm14, %v856_v23  ;;  %v433_v23 = vld [vmem:[#allocation5] sm:$0xff] }
 0x6ae   :  { %2194 = vmatpush3.bf16.xpose.msra.mxu0 %v1082_v26  ;;  %2195 = vmatprep.mubr.msk.bf16.mxu0 %vm2502_vm9, %v2501_v34 }
 0x6af   :  { %2199 = vmatprep.subr.bf16.mxu0 %v2501_v34 }
 0x6b5   :  { %2196 = vmatmul.mubr.msk.bf16.vlgmr.msra.gmra.mrb[20].mxu0 %vm445_vm10, %v1075_v24  ;;  %v434_v24 = vld [vmem:[#allocation5 + $0x8] sm:$0xff] }
 0x6b6   :  { %2200 = vmatpush3.bf16.xpose.msra.mxu0 %v1133_v28  ;;  %2201 = vmatprep.mubr.msk.bf16.mxu0 %vm2502_vm9, %v2501_v34  ;;  %v437_v26 = vpack.c.bf16 %v434_v24, %v433_v23 }
 0x6b7   :  { %2211 = vmatprep.subr.bf16.mxu0 %v2501_v34 }
 0x6b8   :  { %v956_v27 = vrot.slane %v437_v26, 4 }
 0x6ba   :  { %v965_v28 = vsel %vm963_vm1, %v956_v27, 0 }
 0x6bd   :  { %2202 = vmatmul.mubr.msk.bf16.vlgmr.msra.gmra.mrb[24].mxu0 %vm445_vm10, %v1126_v29 }
 0x6be   :  { %2213 = vmatprep.mubr.msk.bf16.mxu0 %vm2502_vm9, %v2501_v34 }
 0x6d4   :  { %v816_v12 = vpop.xlane.xlu0 %815 }
 0x6d5   :  { %v824_v13 = vsub.f32 %v808_v6, %v816_v12 }
 0x6d6   :  { %v813_v21 = vpop.xlane.xlu1 %812 }
 0x6d7   :  { %v823_v32 = vsub.f32 %v807_v7, %v813_v21  ;;  %v829_v33 = vmul.f32 1.442695, %v824_v13 }
 0x6d9   :  { %v827_v35 = vmul.f32 1.442695, %v823_v32 }
 0x6da   :  { %v859_v36 = vpop.permute.xlu1 %858 }
 0x6db   :  { %2342 = vpow2.f32 %v827_v35  ;;  %2170 = vmatpush3.bf16.msra.mxu1 %v859_v36 }
 0x6dc   :  { %2344 = vpow2.f32 %v829_v33  ;;  %2285 = vmatprep.subr.msk.bf16.mxu1 %vm963_vm1, %v956_v27 }
 0x6e5   :  { %v2343_v37 = vpop.eup %2342 }
 0x6e6   :  { %v835_v38 = vsel %vm560_vm14, %v2343_v37, 0.0  ;;  %v2345_v39 = vpop.eup %2344 }
 0x6e7   :  { %836 = vadd.xlane.f32.xlu0 %v835_v38  ;;  %v838_v40 = vsel %vm560_vm14, %v2345_v39, 0.0 }
 0x6eb   :  { %839 = vadd.xlane.f32.xlu0 %v838_v40 }
 0x774   :  { %v837_v41 = vpop.xlane.xlu0 %836 }
 0x775   :  { %2346 = vrcp.f32 %v837_v41 }
 0x778   :  { %v840_v42 = vpop.xlane.xlu0 %839 }
 0x779   :  { %2348 = vrcp.f32 %v840_v42 }
 0x77f   :  { %v2347_v44 = vpop.eup %2346 }
 0x780   :  { %v2884_v43 = vpop.f32.mrb[16].mxu0  ;;  %v848_v50 = vmul.f32 %v2347_v44, %v2343_v37 }
 0x781   :  { %v2179_v45 = vpop.f32.mrb[17].mxu0 }
 0x782   :  { %v2886_v46 = vpop.f32.mrb[18].mxu0 }
 0x783   :  { %v2349_v47 = vpop.eup %2348  ;;  %v954_v48 = vpack.c.bf16 %v2886_v46, %v2884_v43  ;;  %v2180_v49 = vpop.f32.mrb[19].mxu0 }
 0x784   :  { %v850_v51 = vmul.f32 %v2349_v47, %v2345_v39 }
 0x786   :  { %v855_v52 = vpack.c.bf16 %v850_v51, %v848_v50 }
 0x788   :  { %2172 = vmatmul.mubr.msk.bf16.vlgmr.msra.gmra.mrb[20].mxu1 %vm560_vm14, %v855_v52  ;;  %v1118_v58 = vpop.f32.mrb[20].mxu0 }
 0x789   :  { %v1176_v61 = vmul.f32 0.35355338, %v1118_v58  ;;  %v2197_v62 = vpop.f32.mrb[21].mxu0  ;;  %2182 = vmatpush3.bf16.msra.mxu1 %v965_v28 }
 0x78a   :  { %v1121_v63 = vpop.f32.mrb[22].mxu0  ;;  %2286 = vmatprep.subr.msk.bf16.mxu1 %vm963_vm1, %v437_v26 }
 0x78b   :  { %v1177_v0 = vmul.f32 0.35355338, %v1121_v63  ;;  %v2198_v1 = vpop.f32.mrb[23].mxu0  ;;  %v1180_v4 = vsel %vm554_vm15, %v1176_v61, -1e+09 }
 0x78c   :  { %v1184_v5 = vsel %vm560_vm14, %v1180_v4, -inf }
 0x78d   :  { %1185 = vmax.xlane.f32.xlu0 %v1184_v5  ;;  %v1181_v6 = vsel %vm554_vm15, %v1177_v0, -1e+09  ;;  %v1023_v0 = vsel %vm963_vm1, %v437_v26, 0 }
 0x78e   :  { %v1187_v8 = vsel %vm560_vm14, %v1181_v6, -inf }
 0x790   :  { %v1169_v7 = vpop.f32.mrb[24].mxu0 }
 0x791   :  { %v1178_v9 = vmul.f32 0.35355338, %v1169_v7  ;;  %v2203_v10 = vpop.f32.mrb[25].mxu0  ;;  %1188 = vmax.xlane.f32.xlu0 %v1187_v8 }
 0x792   :  { %v1172_v11 = vpop.f32.mrb[26].mxu0  ;;  %v435_v10 = vld [vmem:[#allocation5 + $0x10] sm:$0xff] }
 0x793   :  { %v1179_v14 = vmul.f32 0.35355338, %v1172_v11  ;;  %v2204_v15 = vpop.f32.mrb[27].mxu0  ;;  %v1182_v16 = vsel %vm555_vm13, %v1178_v9, -1e+09  ;;  %v436_v11 = vld [vmem:[#allocation5 + $0x18] sm:$0xff] }
 0x794   :  { %v1190_v17 = vsel %vm560_vm14, %v1182_v16, -inf }
 0x795   :  { %1191 = vmax.xlane.f32.xlu0 %v1190_v17  ;;  %v1183_v18 = vsel %vm555_vm13, %v1179_v14, -1e+09  ;;  %v2949_v14 = vpack.c.bf16 %v436_v11, %v435_v10 }
 0x796   :  { %v1193_v22 = vsel %vm560_vm14, %v1183_v18, -inf }
 0x797   :  { %v1333_v15 = vsel %vm963_vm1, %v2949_v14, 0 }
 0x799   :  { %1194 = vmax.xlane.f32.xlu0 %v1193_v22 }
 0x81a   :  { %v1186_v29 = vpop.xlane.xlu0 %1185 }
 0x81b   :  { %v1196_v12 = vsub.f32 %v1180_v4, %v1186_v29 }
 0x81d   :  { %v1200_v13 = vmul.f32 1.442695, %v1196_v12 }
 0x81e   :  { %v1189_v21 = vpop.xlane.xlu0 %1188 }
 0x81f   :  { %2350 = vpow2.f32 %v1200_v13  ;;  %v1197_v32 = vsub.f32 %v1181_v6, %v1189_v21 }
 0x821   :  { %v1202_v33 = vmul.f32 1.442695, %v1197_v32 }
 0x822   :  { %v1192_v35 = vpop.xlane.xlu0 %1191 }
 0x823   :  { %2352 = vpow2.f32 %v1202_v33  ;;  %v1198_v36 = vsub.f32 %v1182_v16, %v1192_v35 }
 0x825   :  { %v1204_v37 = vmul.f32 1.442695, %v1198_v36 }
 0x826   :  { %v1195_v38 = vpop.xlane.xlu0 %1194 }
 0x827   :  { %2354 = vpow2.f32 %v1204_v37  ;;  %v1199_v39 = vsub.f32 %v1183_v18, %v1195_v38 }
 0x829   :  { %v2351_v40 = vpop.eup %2350  ;;  %v1206_v41 = vmul.f32 1.442695, %v1199_v39 }
 0x82a   :  { %v1208_v42 = vsel %vm560_vm14, %v2351_v40, 0.0 }
 0x82b   :  { %2356 = vpow2.f32 %v1206_v41  ;;  %1209 = vadd.xlane.f32.xlu1 %v1208_v42 }
 0x82d   :  { %v2353_v44 = vpop.eup %2352 }
 0x82e   :  { %v1211_v45 = vsel %vm560_vm14, %v2353_v44, 0.0 }
 0x82f   :  { %1212 = vadd.xlane.f32.xlu0 %v1211_v45 }
 0x831   :  { %v2355_v47 = vpop.eup %2354 }
 0x832   :  { %v1214_v49 = vsel %vm560_vm14, %v2355_v47, 0.0 }
 0x833   :  { %1215 = vadd.xlane.f32.xlu0 %v1214_v49 }
 0x835   :  { %v2357_v50 = vpop.eup %2356 }
 0x836   :  { %v1217_v51 = vsel %vm560_vm14, %v2357_v50, 0.0 }
 0x837   :  { %1218 = vadd.xlane.f32.xlu0 %v1217_v51 }
 0x83c   :  { %1277 = vrot.lane.b32.xlu1 %v2750_v54, %s2506_s27 }
 0x84d   :  { %1230 = vrot.lane.b32.xlu0 %v2754_v56, %s2506_s27 }
 0x851   :  { %1390 = vrot.lane.b32.xlu0 %v2761_v3, %s2507_s29 }
 0x855   :  { %1441 = vrot.lane.b32.xlu0 %v2759_v2, %s2507_s29 }
 0x859   :  { %1388 = vrot.lane.b32.xlu0 %v2752_v55, %s2507_s29 }
 0x85b   :  { %v898_v52 = vpop.f32.mrb[20].mxu1 }
 0x85c   :  { %v2173_v58 = vpop.f32.mrb[21].mxu1 }
 0x85d   :  { %1439 = vrot.lane.b32.xlu0 %v2748_v53, %s2507_s29  ;;  %v901_v61 = vpop.f32.mrb[22].mxu1 }
 0x85e   :  { %v953_v62 = vpack.c.bf16 %v901_v61, %v898_v52  ;;  %v2174_v63 = vpop.f32.mrb[23].mxu1 }
 0x860   :  { %2183 = vmatprep.mubr.msk.bf16.mxu1 %vm445_vm10, %v953_v62 }
 0x861   :  { %2184 = vmatmul.mubr.msk.bf16.vlgmr.msra.gmra.mrb[24].mxu1 %vm445_vm10, %v954_v48 }
 0x862   :  { %2189 = vmatprep.mubr.msk.bf16.mxu1 %vm445_vm10, %v695_v60  ;;  %2188 = vmatpush3.bf16.msra.mxu1 %v1023_v0 }
 0x863   :  { %2205 = vmatprep.subr.bf16.mxu1 %v2501_v34 }
 0x86d   :  { %2190 = vmatmul.mubr.msk.bf16.vlgmr.msra.gmra.mrb[24].mxu1 %vm445_vm10, %v696_v31 }
 0x86e   :  { %2207 = vmatprep.mubr.msk.bf16.mxu1 %vm2502_vm9, %v2501_v34 }
 0x8b8   :  { %v1210_v53 = vpop.xlane.xlu1 %1209 }
 0x8b9   :  { %2358 = vrcp.f32 %v1210_v53 }
 0x8bc   :  { %v1278_v55 = vpop.permute.xlu1 %1277  ;;  %v1213_v2 = vpop.xlane.xlu0 %1212 }
 0x8bd   :  { %2360 = vrcp.f32 %v1213_v2  ;;  %2212 = vmatpush3.bf16.msra.mxu0 %v1278_v55 }
 0x8be   :  { %2223 = vmatprep.subr.bf16.mxu0 %v2501_v34 }
 0x8c0   :  { %v1216_v3 = vpop.xlane.xlu0 %1215 }
 0x8c1   :  { %2362 = vrcp.f32 %v1216_v3 }
 0x8c3   :  { %v2359_v59 = vpop.eup %2358 }
 0x8c4   :  { %v1219_v57 = vpop.xlane.xlu0 %1218  ;;  %v1221_v30 = vmul.f32 %v2359_v59, %v2351_v40 }
 0x8c5   :  { %2364 = vrcp.f32 %v1219_v57 }
 0x8c7   :  { %v2361_v60 = vpop.eup %2360 }
 0x8c8   :  { %v1223_v20 = vmul.f32 %v2361_v60, %v2353_v44  ;;  %v1231_v31 = vpop.permute.xlu0 %1230 }
 0x8c9   :  { %2206 = vmatpush3.bf16.msra.mxu1 %v1231_v31 }
 0x8ca   :  { %v1228_v43 = vpack.c.bf16 %v1223_v20, %v1221_v30  ;;  %2287 = vmatprep.subr.msk.bf16.mxu1 %vm963_vm1, %v2949_v14 }
 0x8cb   :  { %v2363_v46 = vpop.eup %2362 }
 0x8cc   :  { %2208 = vmatmul.mubr.msk.bf16.vlgmr.msra.gmra.mrb[28].mxu1 %vm560_vm14, %v1228_v43  ;;  %v1391_v1 = vpop.permute.xlu0 %1390  ;;  %v1225_v4 = vmul.f32 %v2363_v46, %v2355_v47 }
 0x8cd   :  { %v1396_v7 = vsel %vm445_vm10, %v1391_v1, 0  ;;  %2218 = vmatpush3.bf16.msra.mxu1 %v1333_v15 }
 0x8ce   :  { %2229 = vmatprep.subr.bf16.mxu1 %v2501_v34 }
 0x8cf   :  { %v2365_v48 = vpop.eup %2364 }
 0x8d0   :  { %v1227_v5 = vmul.f32 %v2365_v48, %v2357_v50  ;;  %v1442_v8 = vpop.permute.xlu0 %1441 }
 0x8d1   :  { %v1447_v12 = vsel %vm445_vm10, %v1442_v8, 0 }
 0x8d2   :  { %v1229_v6 = vpack.c.bf16 %v1227_v5, %v1225_v4 }
 0x8d4   :  { %2214 = vmatmul.mubr.msk.bf16.vlgmr.msra.gmra.mrb[28].mxu0 %vm560_vm14, %v1229_v6  ;;  %v1389_v9 = vpop.permute.xlu0 %1388 }
 0x8d5   :  { %2224 = vmatpush3.bf16.xpose.msra.mxu0 %v1396_v7  ;;  %2225 = vmatprep.mubr.msk.bf16.mxu0 %vm2502_vm9, %v2501_v34 }
 0x8d6   :  { %2235 = vmatprep.subr.bf16.mxu0 %v2501_v34 }
 0x8d8   :  { %v1440_v38 = vpop.permute.xlu0 %1439 }
 0x8dc   :  { %2226 = vmatmul.mubr.msk.bf16.vlgmr.msra.gmra.mrb[32].mxu0 %vm445_vm10, %v1389_v9 }
 0x8dd   :  { %2237 = vmatprep.mubr.msk.bf16.mxu0 %vm2502_vm9, %v2501_v34 }
 0x99f   :  { %v1270_v16 = vpop.f32.mrb[28].mxu1 }
 0x9a0   :  { %v2209_v17 = vpop.f32.mrb[29].mxu1 }
 0x9a1   :  { %v1273_v18 = vpop.f32.mrb[30].mxu1 }
 0x9a2   :  { %v1324_v22 = vpack.c.bf16 %v1273_v18, %v1270_v16  ;;  %v2210_v23 = vpop.f32.mrb[31].mxu1 }
 0x9a4   :  { %2219 = vmatprep.mubr.msk.bf16.mxu1 %vm445_vm10, %v1324_v22 }
 0x9a7   :  { %v1317_v24 = vpop.f32.mrb[28].mxu0 }
 0x9a8   :  { %v2215_v26 = vpop.f32.mrb[29].mxu0 }
 0x9a9   :  { %v1320_v27 = vpop.f32.mrb[30].mxu0 }
 0x9aa   :  { %v1325_v28 = vpack.c.bf16 %v1320_v27, %v1317_v24  ;;  %v2216_v29 = vpop.f32.mrb[31].mxu0  ;;  %v1641_v24 = vrot.slane %v2949_v14, 4  ;;  %v2034_v14 = vld [vmem:[%s3127_s11] ss:$0 sm:$0xff] }
 0x9ac   :  { %2220 = vmatmul.mubr.msk.bf16.vlgmr.msra.gmra.mrb[24].mxu1 %vm445_vm10, %v1325_v28  ;;  %v1649_v26 = vsel %vm963_vm1, %v1641_v24, 0 }
 0x9ad   :  { %2230 = vmatpush3.bf16.xpose.msra.mxu1 %v1447_v12  ;;  %2231 = vmatprep.mubr.msk.bf16.mxu1 %vm2502_vm9, %v2501_v34 }
 0x9ae   :  { %2241 = vmatprep.subr.bf16.mxu1 %v2501_v34 }
 0x9af   :  { %v1432_v13 = vpop.f32.mrb[32].mxu0 }
 0x9b0   :  { %v1490_v21 = vmul.f32 0.35355338, %v1432_v13  ;;  %v2227_v32 = vpop.f32.mrb[33].mxu0 }
 0x9b1   :  { %v1435_v33 = vpop.f32.mrb[34].mxu0 }
 0x9b2   :  { %v1491_v35 = vmul.f32 0.35355338, %v1435_v33  ;;  %v2228_v36 = vpop.f32.mrb[35].mxu0  ;;  %v1494_v37 = vsel %vm554_vm15, %v1490_v21, -1e+09 }
 0x9b3   :  { %v1498_v39 = vsel %vm560_vm14, %v1494_v37, -inf }
 0x9b4   :  { %1499 = vmax.xlane.f32.xlu0 %v1498_v39  ;;  %2232 = vmatmul.mubr.msk.bf16.vlgmr.msra.gmra.mrb[32].mxu1 %vm445_vm10, %v1440_v38  ;;  %v1495_v40 = vsel %vm554_vm15, %v1491_v35, -1e+09 }
 0x9b5   :  { %v1501_v41 = vsel %vm560_vm14, %v1495_v40, -inf  ;;  %2243 = vmatprep.mubr.msk.bf16.mxu1 %vm2502_vm9, %v2501_v34 }
 0x9b6   :  { %1502 = vmax.xlane.f32.xlu1 %v1501_v41 }
 0xa41   :  { %v1500_v42 = vpop.xlane.xlu0 %1499 }
 0xa42   :  { %v1510_v44 = vsub.f32 %v1494_v37, %v1500_v42 }
 0xa43   :  { %v1503_v50 = vpop.xlane.xlu1 %1502 }
 0xa44   :  { %v1514_v45 = vmul.f32 1.442695, %v1510_v44  ;;  %v1511_v51 = vsub.f32 %v1495_v40, %v1503_v50  ;;  %v2398_v44 = vld [vmem:[%s3139_s28] sm:$0xff]  ;;  %v2399_v50 = vld [vmem:[%s3139_s28 + $0x10] sm:$0xff] }
 0xa46   :  { %2366 = vpow2.f32 %v1514_v45  ;;  %v1516_v52 = vmul.f32 1.442695, %v1511_v51 }
 0xa48   :  { %2368 = vpow2.f32 %v1516_v52  ;;  %v2400_v52 = vld [vmem:[%s3139_s28 + $0x8] sm:$0xff] }
 0xa50   :  { %v2367_v47 = vpop.eup %2366 }
 0xa51   :  { %v1522_v49 = vsel %vm560_vm14, %v2367_v47, 0.0 }
 0xa52   :  { %1523 = vadd.xlane.f32.xlu1 %v1522_v49  ;;  %v2369_v3 = vpop.eup %2368 }
 0xa53   :  { %v1525_v57 = vsel %vm560_vm14, %v2369_v3, 0.0 }
 0xa87   :  { %v1483_v19 = vpop.f32.mrb[32].mxu1 }
 0xa88   :  { %v1492_v58 = vmul.f32 0.35355338, %v1483_v19  ;;  %v2233_v61 = vpop.f32.mrb[33].mxu1 }
 0xa89   :  { %v1486_v62 = vpop.f32.mrb[34].mxu1  ;;  %v2401_v61 = vld [vmem:[%s3139_s28 + $0x18] sm:$0xff] }
 0xa8a   :  { %v1493_v63 = vmul.f32 0.35355338, %v1486_v62  ;;  %v2234_v0 = vpop.f32.mrb[35].mxu1  ;;  %v1496_v34 = vsel %vm555_vm13, %v1492_v58, -1e+09 }
 0xa8b   :  { %v1504_v53 = vsel %vm560_vm14, %v1496_v34, -inf }
 0xa8c   :  { %1505 = vmax.xlane.f32.xlu0 %v1504_v53  ;;  %v1497_v55 = vsel %vm555_vm13, %v1493_v63, -1e+09 }
 0xa8d   :  { %v1507_v2 = vsel %vm560_vm14, %v1497_v55, -inf }
 0xa90   :  { %1508 = vmax.xlane.f32.xlu0 %v1507_v2 }
 0xa94   :  { %1526 = vadd.xlane.f32.xlu0 %v1525_v57 }
 0xadf   :  { %v1524_v5 = vpop.xlane.xlu1 %1523 }
 0xb19   :  { %v1506_v59 = vpop.xlane.xlu0 %1505 }
 0xb1a   :  { %v1512_v60 = vsub.f32 %v1496_v34, %v1506_v59 }
 0xb1c   :  { %v1518_v30 = vmul.f32 1.442695, %v1512_v60 }
 0xb1d   :  { %v1509_v20 = vpop.xlane.xlu0 %1508 }
 0xb1e   :  { %2370 = vpow2.f32 %v1518_v30  ;;  %v1513_v31 = vsub.f32 %v1497_v55, %v1509_v20 }
 0xb20   :  { %v1520_v43 = vmul.f32 1.442695, %v1513_v31 }
 0xb21   :  { %v1527_v4 = vpop.xlane.xlu0 %1526 }
 0xb22   :  { %2372 = vpow2.f32 %v1520_v43 }
 0xb23   :  { %2374 = vrcp.f32 %v1527_v4 }
 0xb24   :  { %2376 = vrcp.f32 %v1524_v5 }
 0xb28   :  { %v2371_v46 = vpop.eup %2370 }
 0xb29   :  { %v1528_v48 = vsel %vm560_vm14, %v2371_v46, 0.0 }
 0xb2a   :  { %1529 = vadd.xlane.f32.xlu1 %v1528_v48 }
 0xb2c   :  { %v2373_v25 = vpop.eup %2372 }
 0xb2d   :  { %v1531_v1 = vsel %vm560_vm14, %v2373_v25, 0.0  ;;  %v2375_v6 = vpop.eup %2374 }
 0xb2e   :  { %1532 = vadd.xlane.f32.xlu0 %v1531_v1  ;;  %v2377_v8 = vpop.eup %2376  ;;  %v1537_v9 = vmul.f32 %v2375_v6, %v2369_v3 }
 0xb2f   :  { %v1535_v10 = vmul.f32 %v2377_v8, %v2367_v47 }
 0xb31   :  { %v1542_v16 = vpack.c.bf16 %v1537_v9, %v1535_v10  ;;  %v1823_v9 = vld [vmem:[#allocation7] sm:$0xff]  ;;  %v1824_v10 = vld [vmem:[#allocation7 + $0x8] sm:$0xff] }
 0xb3b   :  { %1544 = vrot.lane.b32.xlu1 %v2754_v56, %s2507_s29 }
 0xb44   :  { %1591 = vrot.lane.b32.xlu0 %v2750_v54, %s2507_s29 }
 0xbb7   :  { %v1530_v7 = vpop.xlane.xlu1 %1529 }
 0xbb8   :  { %2378 = vrcp.f32 %v1530_v7 }
 0xbbb   :  { %v1545_v11 = vpop.permute.xlu1 %1544  ;;  %v1533_v15 = vpop.xlane.xlu0 %1532 }
 0xbbc   :  { %2380 = vrcp.f32 %v1533_v15  ;;  %2236 = vmatpush3.bf16.msra.mxu0 %v1545_v11  ;;  %v1825_v11 = vld [vmem:[#allocation7 + $0x10] sm:$0xff]  ;;  %v1827_v15 = vpack.c.bf16 %v1824_v10, %v1823_v9  ;;  %v1900_v10 = vld [vmem:[%s3132_s16 + $0x18] sm:$0xff] }
 0xbbe   :  { %2253 = vmatprep.subr.bf16.mxu0 %v1827_v15 }
 0xbbf   :  { %2238 = vmatmul.mubr.msk.bf16.vlgmr.msra.gmra.mrb[36].mxu0 %vm560_vm14, %v1542_v16  ;;  %v1592_v56 = vpop.permute.xlu0 %1591  ;;  %v1826_v16 = vld [vmem:[#allocation7 + $0x18] sm:$0xff] }
 0xbc0   :  { %2242 = vmatpush3.bf16.msra.mxu1 %v1592_v56  ;;  %v1828_v56 = vpack.c.bf16 %v1826_v16, %v1825_v11  ;;  %2254 = vmatpush3.bf16.msra.mxu0 %v1827_v15  ;;  %v1901_v16 = vld [vmem:[%s3132_s16 + $0x20] sm:$0xff] }
 0xbc1   :  { %2288 = vmatprep.subr.msk.bf16.mxu1 %vm963_vm1, %v1641_v24 }
 0xbc2   :  { %v2379_v54 = vpop.eup %2378  ;;  %2255 = vmatprep.subr.bf16.mxu0 %v1828_v56 }
 0xbc3   :  { %v1539_v18 = vmul.f32 %v2379_v54, %v2371_v46  ;;  %v1897_v54 = vld [vmem:[%s3132_s16] sm:$0xff] }
 0xbc4   :  { %2256 = vmatpush3.bf16.msra.mxu0 %v1828_v56  ;;  %v1902_v56 = vld [vmem:[%s3132_s16 + $0x28] sm:$0xff] }
 0xbc6   :  { %v2381_v17 = vpop.eup %2380 }
 0xbc7   :  { %v1541_v22 = vmul.f32 %v2381_v17, %v2373_v25  ;;  %v1898_v17 = vld [vmem:[%s3132_s16 + $0x8] sm:$0xff] }
 0xbc9   :  { %v1543_v23 = vpack.c.bf16 %v1541_v22, %v1539_v18  ;;  %v3053_v18 = vpack.c.bf16 %v1898_v17, %v1897_v54  ;;  %v1907_v54 = vpack.c.bf16 %v1902_v56, %v1901_v16  ;;  %v1903_v17 = vld [vmem:[%s3132_s16 + $0x30] sm:$0xff] }
 0xbcb   :  { %2244 = vmatmul.mubr.msk.bf16.vlgmr.msra.gmra.mrb[36].mxu1 %vm560_vm14, %v1543_v23  ;;  %2261 = vmatprep.subr.bf16.mxu0 %v3053_v18 }
 0xbcc   :  { %2248 = vmatpush3.bf16.msra.mxu1 %v1649_v26 }
 0xc92   :  { %v1584_v27 = vpop.f32.mrb[36].mxu0 }
 0xc93   :  { %v2239_v28 = vpop.f32.mrb[37].mxu0 }
 0xc94   :  { %v1587_v29 = vpop.f32.mrb[38].mxu0 }
 0xc95   :  { %v1638_v12 = vpack.c.bf16 %v1587_v29, %v1584_v27  ;;  %v2240_v13 = vpop.f32.mrb[39].mxu0 }
 0xc97   :  { %2249 = vmatprep.mubr.msk.bf16.mxu1 %vm445_vm10, %v1638_v12 }
 0xc9e   :  { %v1631_v21 = vpop.f32.mrb[36].mxu1 }
 0xc9f   :  { %v2245_v32 = vpop.f32.mrb[37].mxu1 }
 0xca0   :  { %v1634_v33 = vpop.f32.mrb[38].mxu1 }
 0xca1   :  { %v1639_v35 = vpack.c.bf16 %v1634_v33, %v1631_v21  ;;  %v2246_v36 = vpop.f32.mrb[39].mxu1 }
 0xca3   :  { %2250 = vmatmul.mubr.msk.bf16.vlgmr.msra.gmra.mrb[24].mxu1 %vm445_vm10, %v1639_v35  ;;  %vm1916_vm10 = vcmask 523264  }
 0xd76   :  { %v2251_v37 = vpop.f32.mrb[24].mxu1 }
 0xd77   :  { %v1685_v38 = vpop.f32.mrb[25].mxu1  ;;  %v1713_v39 = vadd.f32 %v2251_v37, %v2034_v14 }
 0xd78   :  { %v1711_v40 = vadd.f32 %v2034_v14, %v1685_v38  ;;  %v2252_v41 = vpop.f32.mrb[26].mxu1 }
 0xd79   :  { %v1688_v42 = vpop.f32.mrb[27].mxu1  ;;  %v1714_v47 = vadd.f32 %v2252_v41, %v2034_v14  ;;  %v3003_v51 = vadd.f32 %v2399_v50, %v1713_v39 }
 0xd7a   :  { %v2998_v45 = vadd.f32 %v2398_v44, %v1711_v40  ;;  %v1712_v49 = vadd.f32 %v2034_v14, %v1688_v42 }
 0xd7b   :  { %v3015_v62 = vadd.f32 %v2401_v61, %v1714_v47  ;;  %v1727_v0 = vsel %vm136_vm0, %v3003_v51, 0.0 }
 0xd7c   :  { %v3008_v19 = vadd.f32 %v2400_v52, %v1712_v49  ;;  %v1721_v58 = vsel %vm136_vm0, %v2998_v45, 0.0 }
 0xd7d   :  { %1722 = vadd.xlane.f32.xlu1 %v1721_v58  ;;  %v1730_v34 = vsel %vm136_vm0, %v3015_v62, 0.0 }
 0xd7e   :  { %v1724_v63 = vsel %vm136_vm0, %v3008_v19, 0.0 }
 0xd7f   :  { %1725 = vadd.xlane.f32.xlu0 %v1724_v63 }
 0xd81   :  { %1728 = vadd.xlane.f32.xlu1 %v1727_v0 }
 0xd83   :  { %1731 = vadd.xlane.f32.xlu0 %v1730_v34 }
 0xe0a   :  { %v1723_v53 = vpop.xlane.xlu1 %1722 }
 0xe0b   :  { %v1733_v55 = vmul.f32 0.03125, %v1723_v53 }
 0xe0c   :  { %v1726_v2 = vpop.xlane.xlu0 %1725 }
 0xe0d   :  { %v3024_v3 = vsub.f32 %v2998_v45, %v1733_v55  ;;  %v1734_v57 = vmul.f32 0.03125, %v1726_v2  ;;  %v2035_v55 = vld [vmem:[%s3128_s12] ss:$0 sm:$0xff] }
 0xe0e   :  { %v1729_v59 = vpop.xlane.xlu1 %1728 }
 0xe0f   :  { %v3027_v60 = vsub.f32 %v3008_v19, %v1734_v57  ;;  %v1735_v30 = vmul.f32 0.03125, %v1729_v59  ;;  %v1741_v20 = vmul.f32 %v3024_v3, %v3024_v3  ;;  %v1767_v57 = vmul.f32 %v2035_v55, %v3024_v3 }
 0xe10   :  { %v1732_v31 = vpop.xlane.xlu0 %1731 }
 0xe11   :  { %v3032_v43 = vsub.f32 %v3003_v51, %v1735_v30  ;;  %v1736_v46 = vmul.f32 0.03125, %v1732_v31  ;;  %v1745_v48 = vsel %vm136_vm0, %v1741_v20, 0.0  ;;  %v1742_v25 = vmul.f32 %v3027_v60, %v3027_v60  ;;  %v2036_v31 = vld [vmem:[%s3129_s13] ss:$0 sm:$0xff] }
 0xe12   :  { %1746 = vadd.xlane.f32.xlu1 %v1745_v48  ;;  %v1768_v59 = vmul.f32 %v2035_v55, %v3027_v60  ;;  %v1899_v60 = vld [vmem:[%s3132_s16 + $0x10] sm:$0xff] }
 0xe13   :  { %v3038_v1 = vsub.f32 %v3015_v62, %v1736_v46  ;;  %v1743_v4 = vmul.f32 %v3032_v43, %v3032_v43  ;;  %v1748_v5 = vsel %vm136_vm0, %v1742_v25, 0.0  ;;  %v1769_v48 = vmul.f32 %v2035_v55, %v3032_v43 }
 0xe14   :  { %1749 = vadd.xlane.f32.xlu0 %v1748_v5 }
 0xe15   :  { %v1751_v6 = vsel %vm136_vm0, %v1743_v4, 0.0  ;;  %v1744_v7 = vmul.f32 %v3038_v1, %v3038_v1  ;;  %v1770_v4 = vmul.f32 %v2035_v55, %v3038_v1  ;;  %v1906_v1 = vpack.c.bf16 %v1900_v10, %v1899_v60 }
 0xe16   :  { %1752 = vadd.xlane.f32.xlu1 %v1751_v6 }
 0xe17   :  { %v1754_v8 = vsel %vm136_vm0, %v1744_v7, 0.0 }
 0xe18   :  { %1755 = vadd.xlane.f32.xlu0 %v1754_v8 }
 0xe9f   :  { %v1747_v22 = vpop.xlane.xlu1 %1746 }
 0xea0   :  { %v1757_v23 = vmul.f32 0.032258064, %v1747_v22 }
 0xea1   :  { %v1750_v24 = vpop.xlane.xlu0 %1749 }
 0xea2   :  { %2382 = vrsqrt.f32 %v1757_v23  ;;  %v1758_v26 = vmul.f32 0.032258064, %v1750_v24  ;;  %vm1773_vm2 = vcmp.eq.f32.partialorder %v1757_v23, inf  ;;  %v1776_v32 = vand.u32 2147483648, %v1757_v23 }
 0xea3   :  { %v1753_v27 = vpop.xlane.xlu1 %1752  ;;  %vm1775_vm3 = vcmp.eq.f32.partialorder %v1757_v23, 0.0 }
 0xea4   :  { %v1759_v28 = vmul.f32 0.032258064, %v1753_v27  ;;  %2384 = vrsqrt.f32 %v1758_v26  ;;  %vm1780_vm4 = vcmp.eq.f32.partialorder %v1758_v26, inf  ;;  %v1783_v39 = vand.u32 2147483648, %v1758_v26 }
 0xea5   :  { %v1756_v29 = vpop.xlane.xlu0 %1755  ;;  %vm1782_vm5 = vcmp.eq.f32.partialorder %v1758_v26, 0.0 }
 0xea6   :  { %2386 = vrsqrt.f32 %v1759_v28  ;;  %v1760_v12 = vmul.f32 0.032258064, %v1756_v29  ;;  %vm1787_vm6 = vcmp.eq.f32.partialorder %v1759_v28, inf  ;;  %v1790_v42 = vand.u32 2147483648, %v1759_v28 }
 0xea7   :  { %vm1789_vm7 = vcmp.eq.f32.partialorder %v1759_v28, 0.0 }
 0xea8   :  { %2388 = vrsqrt.f32 %v1760_v12  ;;  %vm1794_vm8 = vcmp.eq.f32.partialorder %v1760_v12, inf  ;;  %v1797_v63 = vand.u32 2147483648, %v1760_v12  ;;  %vm1796_vm9 = vcmp.eq.f32.partialorder %v1760_v12, 0.0 }
 0xeac   :  { %v2383_v13 = vpop.eup %2382 }
 0xead   :  { %v1772_v21 = vmul.f32 %v2383_v13, %v1757_v23 }
 0xeae   :  { %v2385_v33 = vpop.eup %2384 }
 0xeaf   :  { %v1774_v35 = vsel %vm1773_vm2, %v1757_v23, %v1772_v21  ;;  %v1779_v37 = vmul.f32 %v2385_v33, %v1758_v26  ;;  %v2037_v23 = vld [vmem:[%s3131_s15] ss:$0 sm:$0xff]  ;;  %s2508_s15 = smov [#allocation8]  }
 0xeb0   :  { %v2387_v36 = vpop.eup %2386  ;;  %v1777_v14 = vsel %vm1775_vm3, %v1776_v32, %v1774_v35  ;;  %s1985_s21 = sshll.u32 %s2508_s15, 4  ;;  %s1986_s21 = int_to_ptr.vmem [resolvable:$true] %s1985_s21 }
 0xeb1   :  { %v1799_v38 = vadd.f32 1e-06, %v1777_v14  ;;  %v1786_v40 = vmul.f32 %v2387_v36, %v1759_v28  ;;  %v1781_v41 = vsel %vm1780_vm4, %v1758_v26, %v1779_v37  ;;  %p2473_p11 = scmp.lt.s32.totalorder %s1986_s21, %s1986_s21 }
 0xeb2   :  { %v2389_v44 = vpop.eup %2388  ;;  %v1784_v47 = vsel %vm1782_vm5, %v1783_v39, %v1781_v41 }
 0xeb3   :  { %2390 = vrcp.f32 %v1799_v38  ;;  %v1788_v49 = vsel %vm1787_vm6, %v1759_v28, %v1786_v40  ;;  %v1800_v50 = vadd.f32 1e-06, %v1784_v47  ;;  %v1793_v58 = vmul.f32 %v2389_v44, %v1760_v12  ;;  %v2040_v38 = vld [vmem:[%s3133_s17] ss:$0 sm:$0xff]  ;;  %s2468_s17 = scalar_lea.vmem %s1986_s21, 512 }
 0xeb4   :  { %v1791_v52 = vsel %vm1789_vm7, %v1790_v42, %v1788_v49  ;;  %p2469_p10 = scmp.ne.s32.totalorder %s1986_s21, %s2468_s17  ;;  %p2474_p12 = scmp.lt.s32.totalorder %s2468_s17, %s2468_s17 }
 0xeb5   :  { %v1801_v61 = vadd.f32 1e-06, %v1791_v52  ;;  %2392 = vrcp.f32 %v1800_v50  ;;  %v1795_v0 = vsel %vm1794_vm8, %v1760_v12, %v1793_v58 }
 0xeb6   :  { %v1798_v34 = vsel %vm1796_vm9, %v1797_v63, %v1795_v0  ;;  %p2475_p13 = por %p2474_p12, %p2473_p11 }
 0xeb7   :  { %2394 = vrcp.f32 %v1801_v61  ;;  %v1802_v53 = vadd.f32 1e-06, %v1798_v34 }
 0xeb8   :  { %p2476_p0 = pnand %p2475_p13, %p2469_p10 }
 0xeb9   :  { %2396 = vrcp.f32 %v1802_v53 }
 0xebd   :  { %v2391_v2 = vpop.eup %2390 }
 0xebe   :  { %v1804_v30 = vmul.f32 %v2391_v2, %v1767_v57 }
 0xebf   :  { %v2393_v20 = vpop.eup %2392 }
 0xec0   :  { %v1806_v25 = vmul.f32 %v2393_v20, %v1768_v59  ;;  %v1817_v5 = vadd.f32 %v2036_v31, %v1804_v30 }
 0xec1   :  { %v2395_v46 = vpop.eup %2394 }
 0xec2   :  { %v1818_v6 = vadd.f32 %v2036_v31, %v1806_v25  ;;  %v1808_v7 = vmul.f32 %v2395_v46, %v1769_v48 }
 0xec3   :  { %v2397_v8 = vpop.eup %2396 }
 0xec4   :  { %v1821_v9 = vpack.c.bf16 %v1818_v6, %v1817_v5  ;;  %v1810_v3 = vmul.f32 %v2397_v8, %v1770_v4  ;;  %v1819_v43 = vadd.f32 %v2036_v31, %v1808_v7 }
 0xec6   :  { %2257 = vmatprep.mubr.msk.bf16.mxu0 %vm136_vm0, %v1821_v9  ;;  %v1820_v11 = vadd.f32 %v2036_v31, %v1810_v3 }
 0xec8   :  { %v1822_v15 = vpack.c.bf16 %v1820_v11, %v1819_v43 }
 0xeca   :  { %2258 = vmatmul.mubr.msk.bf16.vlgmr.msra.gmra.mrb[40].mxu0 %vm136_vm0, %v1822_v15 }
 0xecb   :  { %2262 = vmatpush3.bf16.msra.mxu0 %v3053_v18  ;;  %v1904_v18 = vld [vmem:[%s3132_s16 + $0x38] sm:$0xff] }
 0xecc   :  { %2263 = vmatprep.subr.bf16.mxu0 %v1906_v1  ;;  %v1908_v22 = vpack.c.bf16 %v1904_v18, %v1903_v17 }
 0xecf   :  { %2264 = vmatpush3.bf16.msra.mxu0 %v1906_v1 }
 0xed0   :  { %2265 = vmatprep.subr.bf16.mxu0 %v1907_v54 }
 0xed3   :  { %2266 = vmatpush3.bf16.msra.mxu0 %v1907_v54 }
 0xed4   :  { %2267 = vmatprep.subr.bf16.mxu0 %v1908_v22 }
 0xed7   :  { %2268 = vmatpush3.bf16.msra.mxu0 %v1908_v22 }
 0xf9d   :  { %v2259_v24 = vpop.f32.mrb[40].mxu0 }
 0xf9e   :  { %v1885_v26 = vadd.f32 %v2259_v24, %v2037_v23  ;;  %v1876_v27 = vpop.f32.mrb[41].mxu0 }
 0xf9f   :  { %v1877_v28 = vadd.f32 %v2037_v23, %v1876_v27  ;;  %v2260_v29 = vpop.f32.mrb[42].mxu0 }
 0xfa0   :  { %v1888_v12 = vadd.f32 %v2260_v29, %v2037_v23  ;;  %v1879_v13 = vpop.f32.mrb[43].mxu0  ;;  %v1893_v32 = vmax.f32 %v1885_v26, 0.0 }
 0xfa1   :  { %v1880_v21 = vadd.f32 %v2037_v23, %v1879_v13  ;;  %v1891_v35 = vmax.f32 %v1877_v28, 0.0 }
 0xfa2   :  { %v1894_v33 = vmax.f32 %v1888_v12, 0.0 }
 0xfa3   :  { %v1892_v36 = vmax.f32 %v1880_v21, 0.0 }
 0xfa4   :  { %v1896_v14 = vpack.c.bf16 %v1894_v33, %v1893_v32 }
 0xfa5   :  { %v1895_v37 = vpack.c.bf16 %v1892_v36, %v1891_v35 }
 0xfa7   :  { %2269 = vmatprep.mubr.msk.bf16.mxu0 %vm1916_vm10, %v1895_v37 }
 0xfa8   :  { %2270 = vmatmul.mubr.msk.bf16.vlgmr.msra.gmra.mrb[44].mxu0 %vm1916_vm10, %v1896_v14 }
0x107b   :  { %v2271_v39 = vpop.f32.mrb[44].mxu0 }
0x107c   :  { %v1966_v40 = vadd.f32 %v2271_v39, %v2040_v38  ;;  %v1957_v41 = vpop.f32.mrb[45].mxu0 }
0x107d   :  { %v1958_v42 = vadd.f32 %v2040_v38, %v1957_v41  ;;  %v2272_v44 = vpop.f32.mrb[46].mxu0 }
0x107e   :  { %v1974_v47 = vadd.f32 %v1966_v40, %v3003_v51  ;;  %v1969_v49 = vadd.f32 %v2272_v44, %v2040_v38  ;;  %v1960_v50 = vpop.f32.mrb[47].mxu0 }
0x107f   :  { %v1972_v52 = vadd.f32 %v1958_v42, %v2998_v45  ;;  %v1961_v58 = vadd.f32 %v2040_v38, %v1960_v50 }
0x1080   :  { %1978 = vst.msk [vmem:[#allocation8 + $0x10] sm:$0xff] %vm136_vm0, %v1974_v47  ;;  %v1975_v61 = vadd.f32 %v1969_v49, %v3015_v62 }
0x1081   :  { %1976 = vst.msk [vmem:[#allocation8] sm:$0xff] %vm136_vm0, %v1972_v52  ;;  %v1973_v63 = vadd.f32 %v1961_v58, %v3008_v19 }
0x1082   :  { %1979 = vst.msk [vmem:[#allocation8 + $0x18] sm:$0xff] %vm136_vm0, %v1975_v61 }
0x1083   :  { %1977 = vst.msk [vmem:[#allocation8 + $0x8] sm:$0xff] %vm136_vm0, %v1973_v63 }
0x1084   :  { %2479 = shalt.err (!%p2476_p0)
}
0x1085   :  { %s2480_s3 = scalar_lea.hbm %s3134_s18, 512 }
0x1086   :  { %p2481_p1 = scmp.ne.s32.totalorder %s3134_s18, %s2480_s3  ;;  %p2484_p2 = scmp.lt.u32.totalorder %s2480_s3, %s3134_s18 }
0x1088   :  { %p2486_p3 = pnand %p2484_p2, %p2481_p1 }
0x108a   :  { %2489 = shalt.err (!%p2486_p3)
}
0x108b   :  { %1991 = dma.vmem_to_hbm [thread:$0]  %s1986_s21, 512, %s3134_s18, [#allocation4], %s2498_s24, %s2498_s24, %s2499_s25  }
0x108c   :  { %2494 = dma.done.wait [#allocation4], 512  }
0x108d   :  { %2495 = vsyncadd [#allocation4], 4294966784 }
0x108e   :  { %1995 = vsyncpa [#allocation3], 1 }
0x108f   :  { %1996 = vsyncpa [#allocation6], 1 }
0x1090   :  { %1997 = vsyncpa [#allocation4], 1 }

</bundles_post_ra>
